<compile_context>
chip_gen: v5e
topology: v5e:2x2
jax: 0.10.0
libtpu: 0.0.40
codegen_flags: <defaults>
</compile_context>

<pallas_src>
import functools

import numpy as np

import jax
import jax.numpy as jnp
from jax import lax
from jax.experimental import pallas as pl
from jax.experimental.pallas import tpu as pltpu


# -----------------------------------------------------------------------------
# Fused Pallas kernel: per batch element
#   codes_ref (VMEM, i32[1, S, Nc])   : masked codes (mask_token already applied)
#   c2h_ref   (VMEM, bf16[Nc, V, D])  : folded (codebook embedding @ input projection)
#   w1_ref    (VMEM, bf16[L, D, D])   : synthetic transformer layer weights (in)
#   w2_ref    (VMEM, bf16[L, D, D])   : synthetic transformer layer weights (out)
# output:
#   out_ref   (VMEM, f32[1, 1, D])    : mean over seq of activations[extract_idx]
# -----------------------------------------------------------------------------
def _vampnet_kernel(codes_ref, c2h_ref, w1_ref, w2_ref, out_ref, *, extract_idx):
    _, S, Nc = codes_ref.shape
    _, V, D = c2h_ref.shape

    codes = codes_ref[0]                                        # (S, Nc) int32
    iota = lax.broadcasted_iota(jnp.int32, (S, V), 1)           # (S, V)

    # Embedding lookup as one-hot @ table (gather-as-matmul, MXU friendly).
    # Folding the per-codebook table with the input projection makes the sum over
    # codebooks mathematically identical to concat(from_codes) @ W_proj.
    h = None
    for c in range(Nc):
        onehot = (codes[:, c:c + 1] == iota).astype(jnp.bfloat16)          # (S, V)
        contrib = jnp.dot(onehot, c2h_ref[c],
                          preferred_element_type=jnp.float32)              # (S, D) f32
        h = contrib if h is None else h + contrib

    # Transformer-style residual layers; only layers up to the extract layer are
    # needed for the output (later layers would be dead work).
    for l in range(extract_idx + 1):
        u = jnp.tanh(jnp.dot(h.astype(jnp.bfloat16), w1_ref[l],
                             preferred_element_type=jnp.float32))          # (S, D)
        h = h + jnp.dot(u.astype(jnp.bfloat16), w2_ref[l],
                        preferred_element_type=jnp.float32)                # (S, D)

    # aggregate(..., agg_type='all'): mean over the sequence axis -> (1, 1, D)
    out_ref[...] = jnp.mean(h, axis=0, keepdims=True)[None].astype(out_ref.dtype)


def _vampnet_extract_impl(codes_t, c2h, w1, w2, *, extract_idx):
    B, S, Nc = codes_t.shape
    _, V, D = c2h.shape
    L = w1.shape[0]

    # (8, 128) tiling sanity (correctness concern from review).
    assert S % 8 == 0, S
    assert V % 128 == 0 and D % 128 == 0, (V, D)

    kernel = functools.partial(_vampnet_kernel, extract_idx=extract_idx)
    return pl.pallas_call(
        kernel,
        out_shape=jax.ShapeDtypeStruct((B, 1, D), jnp.float32),
        grid=(B,),
        in_specs=[
            pl.BlockSpec((1, S, Nc), lambda b: (b, 0, 0)),      # codes: per-batch block
            pl.BlockSpec((Nc, V, D), lambda b: (0, 0, 0)),      # weights: constant index
            pl.BlockSpec((L, D, D), lambda b: (0, 0, 0)),       #  -> DMA'd once, stay
            pl.BlockSpec((L, D, D), lambda b: (0, 0, 0)),       #     resident in VMEM
        ],
        out_specs=pl.BlockSpec((1, 1, D), lambda b: (b, 0, 0)),
        compiler_params=pltpu.CompilerParams(
            dimension_semantics=("parallel",)),                 # megacore on v7x
    )(codes_t, c2h, w1, w2)


vampnet_extract = jax.jit(_vampnet_extract_impl, static_argnames=("extract_idx",))


# -----------------------------------------------------------------------------
# VampNetModule equivalent.
# -----------------------------------------------------------------------------
class VampNetModuleJax:
    def __init__(self, extract_layer=-1, version="coarse", r=0.95,
                 n_codebooks=4, vocab=128, d_model=256, n_layers=2,
                 seq_len=16, hop=64, seed=0, aggregation=True):
        assert version == "coarse"   # TODO(synk): 'c2f' path (inpaint mask + c2f model) not implemented.
        self.version = version
        self.r = r
        self.aggregation = aggregation          # only the default (True, agg_type='all') path is emitted
        self.n_codebooks = n_codebooks
        self.vocab = vocab                      # last index reserved as the mask token
        self.mask_token = vocab - 1
        self.d_model = d_model
        self.n_layers = n_layers
        self.seq_len = seq_len
        self.hop = hop
        self.extract_idx = extract_layer % n_layers

        # Deterministic synthetic stand-in weights (pretrained ckpts not reproducible).
        k = jax.random.split(jax.random.PRNGKey(seed + 1), 4)
        # TODO(synk): pretrained DAC codec encoder has no Pallas equivalent; synthetic framing encoder.
        self.enc_w = (jax.random.normal(k[0], (hop, n_codebooks), jnp.float32)
                      / np.sqrt(hop)).astype(jnp.float32)
        # Folded (codebook embeddings ++ input projection) -> (Nc, V, D), bf16 operands.
        self.c2h = (0.5 * jax.random.normal(k[1], (n_codebooks, vocab, d_model), jnp.float32)
                    ).astype(jnp.bfloat16)
        self.w1 = (jax.random.normal(k[2], (n_layers, d_model, d_model), jnp.float32)
                   / np.sqrt(d_model)).astype(jnp.bfloat16)
        self.w2 = (jax.random.normal(k[3], (n_layers, d_model, d_model), jnp.float32)
                   / np.sqrt(d_model)).astype(jnp.bfloat16)

    def forward(self, wav, key):
        # wav: (B, 1, T) or (B, T); T = seq_len * hop
        if wav.ndim == 3:
            wav = jnp.squeeze(wav, axis=1)
        B, T = wav.shape
        S, Nc, V = self.seq_len, self.n_codebooks, self.vocab
        assert T == S * self.hop

        # --- codec.encode stand-in: deterministic frame projection + quantization ---
        frames = wav.reshape(B, S, self.hop)
        proj = jnp.einsum("bsh,hc->bsc", frames, self.enc_w)          # (B, S, Nc)
        codes = (jnp.abs(proj) * 37.0).astype(jnp.int32) % (V - 1)    # in [0, V-2]
        z = jnp.transpose(codes, (0, 2, 1))                           # (B, Nc, S), torch layout

        # --- pmask.random + mask[:, 1:, :] = 0 + apply_mask(mask_token) ---
        mask = jax.random.bernoulli(key, self.r, z.shape).astype(jnp.int32)
        mask = mask.at[:, 1:, :].set(0)
        z_mask = z * (1 - mask) + self.mask_token * mask

        # Lane-dense layout for the kernel: (B, S, Nc) int32.
        codes_t = jnp.transpose(z_mask, (0, 2, 1)).astype(jnp.int32)

        # Fused kernel: embedding lookup + transformer stack + mean-over-seq aggregation.
        pooled = vampnet_extract(codes_t, self.c2h, self.w1, self.w2,
                                 extract_idx=self.extract_idx)        # (B, 1, D)
        return pooled[:, 0, :]                                        # (B, D)


if __name__ == "__main__":
    key = jax.random.PRNGKey(0)
    k_wav, k_mask = jax.random.split(key)

    B, S, hop, Nc, D = 2, 16, 64, 4, 256
    T = S * hop
    wav = jax.random.normal(k_wav, (B, 1, T), jnp.float32)

    module = VampNetModuleJax(extract_layer=-1, version="coarse", r=0.95,
                              n_codebooks=Nc, vocab=128, d_model=D,
                              n_layers=2, seq_len=S, hop=hop, seed=0)
    out = module.forward(wav, k_mask)
    out = jax.block_until_ready(out)

    assert out.shape == (B, D), out.shape
    assert out.dtype == jnp.float32
    assert bool(jnp.all(jnp.isfinite(out)))

    print("KERNEL_OK")
</pallas_src>

<mosaic_0001>
module attributes {stable_mosaic.version = 11 : i64} {
  func.func @_vampnet_kernel(%arg0: i32, %arg1: memref<1x16x4xi32, #tpu.memory_space<vmem>>, %arg2: memref<4x128x256xbf16, #tpu.memory_space<vmem>>, %arg3: memref<2x256x256xbf16, #tpu.memory_space<vmem>>, %arg4: memref<2x256x256xbf16, #tpu.memory_space<vmem>>, %arg5: memref<1x1x256xf32, #tpu.memory_space<vmem>>) attributes {dimension_semantics = [#tpu.dimension_semantics<parallel>], iteration_bounds = array<i64: 2>, scalar_prefetch = 0 : i64, scratch_operands = 0 : i64, tpu.core_type = #tpu.core_type<tc>, window_params = [{transform_indices = @transform_0, window_bounds = array<i64: 1, 16, 4>}, {pipeline_mode = #tpu.pipeline_mode<synchronous>, transform_indices = @transform_1, window_bounds = array<i64: 4, 128, 256>}, {pipeline_mode = #tpu.pipeline_mode<synchronous>, transform_indices = @transform_2, window_bounds = array<i64: 2, 256, 256>}, {pipeline_mode = #tpu.pipeline_mode<synchronous>, transform_indices = @transform_3, window_bounds = array<i64: 2, 256, 256>}, {transform_indices = @transform_4, window_bounds = array<i64: 1, 1, 256>}]} {
    %c0 = arith.constant 0 : index
    %c0_0 = arith.constant 0 : index
    %c0_1 = arith.constant 0 : index
    %0 = vector.load %arg1[%c0, %c0_0, %c0_1] : memref<1x16x4xi32, #tpu.memory_space<vmem>>, vector<1x16x4xi32>
    %1 = vector.shape_cast %0 : vector<1x16x4xi32> to vector<16x4xi32>
    %2 = tpu.iota {dimensions = array<i32: 1>} : vector<16x128xi32>
    %3 = vector.extract_strided_slice %1 {offsets = [0, 0], sizes = [16, 1], strides = [1, 1]} : vector<16x4xi32> to vector<16x1xi32>
    %4 = vector.broadcast %3 : vector<16x1xi32> to vector<16x128xi32>
    %5 = arith.cmpi eq, %4, %2 : vector<16x128xi32>
    %6 = arith.extui %5 : vector<16x128xi1> to vector<16x128xi32>
    %7 = arith.sitofp %6 : vector<16x128xi32> to vector<16x128xf32>
    %8 = arith.truncf %7 : vector<16x128xf32> to vector<16x128xbf16>
    %c0_2 = arith.constant 0 : index
    %c0_3 = arith.constant 0 : index
    %c0_4 = arith.constant 0 : index
    %9 = vector.load %arg2[%c0_2, %c0_3, %c0_4] : memref<4x128x256xbf16, #tpu.memory_space<vmem>>, vector<1x128x256xbf16>
    %10 = vector.shape_cast %9 : vector<1x128x256xbf16> to vector<128x256xbf16>
    %cst = arith.constant dense<0.000000e+00> : vector<16x256xf32>
    %11 = tpu.matmul %8, %10, %cst {dimension_numbers = #tpu.dot_dimension_numbers<[1], [0], [0], [1], [0, 0, 1, 1], [], []>} : vector<16x128xbf16>, vector<128x256xbf16>, vector<16x256xf32> -> vector<16x256xf32>
    %12 = vector.extract_strided_slice %1 {offsets = [0, 1], sizes = [16, 1], strides = [1, 1]} : vector<16x4xi32> to vector<16x1xi32>
    %13 = vector.broadcast %12 : vector<16x1xi32> to vector<16x128xi32>
    %14 = arith.cmpi eq, %13, %2 : vector<16x128xi32>
    %15 = arith.extui %14 : vector<16x128xi1> to vector<16x128xi32>
    %16 = arith.sitofp %15 : vector<16x128xi32> to vector<16x128xf32>
    %17 = arith.truncf %16 : vector<16x128xf32> to vector<16x128xbf16>
    %c1 = arith.constant 1 : index
    %c0_5 = arith.constant 0 : index
    %c0_6 = arith.constant 0 : index
    %18 = vector.load %arg2[%c1, %c0_5, %c0_6] : memref<4x128x256xbf16, #tpu.memory_space<vmem>>, vector<1x128x256xbf16>
    %19 = vector.shape_cast %18 : vector<1x128x256xbf16> to vector<128x256xbf16>
    %cst_7 = arith.constant dense<0.000000e+00> : vector<16x256xf32>
    %20 = tpu.matmul %17, %19, %cst_7 {dimension_numbers = #tpu.dot_dimension_numbers<[1], [0], [0], [1], [0, 0, 1, 1], [], []>} : vector<16x128xbf16>, vector<128x256xbf16>, vector<16x256xf32> -> vector<16x256xf32>
    %21 = arith.addf %11, %20 : vector<16x256xf32>
    %22 = vector.extract_strided_slice %1 {offsets = [0, 2], sizes = [16, 1], strides = [1, 1]} : vector<16x4xi32> to vector<16x1xi32>
    %23 = vector.broadcast %22 : vector<16x1xi32> to vector<16x128xi32>
    %24 = arith.cmpi eq, %23, %2 : vector<16x128xi32>
    %25 = arith.extui %24 : vector<16x128xi1> to vector<16x128xi32>
    %26 = arith.sitofp %25 : vector<16x128xi32> to vector<16x128xf32>
    %27 = arith.truncf %26 : vector<16x128xf32> to vector<16x128xbf16>
    %c2 = arith.constant 2 : index
    %c0_8 = arith.constant 0 : index
    %c0_9 = arith.constant 0 : index
    %28 = vector.load %arg2[%c2, %c0_8, %c0_9] : memref<4x128x256xbf16, #tpu.memory_space<vmem>>, vector<1x128x256xbf16>
    %29 = vector.shape_cast %28 : vector<1x128x256xbf16> to vector<128x256xbf16>
    %cst_10 = arith.constant dense<0.000000e+00> : vector<16x256xf32>
    %30 = tpu.matmul %27, %29, %cst_10 {dimension_numbers = #tpu.dot_dimension_numbers<[1], [0], [0], [1], [0, 0, 1, 1], [], []>} : vector<16x128xbf16>, vector<128x256xbf16>, vector<16x256xf32> -> vector<16x256xf32>
    %31 = arith.addf %21, %30 : vector<16x256xf32>
    %32 = vector.extract_strided_slice %1 {offsets = [0, 3], sizes = [16, 1], strides = [1, 1]} : vector<16x4xi32> to vector<16x1xi32>
    %33 = vector.broadcast %32 : vector<16x1xi32> to vector<16x128xi32>
    %34 = arith.cmpi eq, %33, %2 : vector<16x128xi32>
    %35 = arith.extui %34 : vector<16x128xi1> to vector<16x128xi32>
    %36 = arith.sitofp %35 : vector<16x128xi32> to vector<16x128xf32>
    %37 = arith.truncf %36 : vector<16x128xf32> to vector<16x128xbf16>
    %c3 = arith.constant 3 : index
    %c0_11 = arith.constant 0 : index
    %c0_12 = arith.constant 0 : index
    %38 = vector.load %arg2[%c3, %c0_11, %c0_12] : memref<4x128x256xbf16, #tpu.memory_space<vmem>>, vector<1x128x256xbf16>
    %39 = vector.shape_cast %38 : vector<1x128x256xbf16> to vector<128x256xbf16>
    %cst_13 = arith.constant dense<0.000000e+00> : vector<16x256xf32>
    %40 = tpu.matmul %37, %39, %cst_13 {dimension_numbers = #tpu.dot_dimension_numbers<[1], [0], [0], [1], [0, 0, 1, 1], [], []>} : vector<16x128xbf16>, vector<128x256xbf16>, vector<16x256xf32> -> vector<16x256xf32>
    %41 = arith.addf %31, %40 : vector<16x256xf32>
    %42 = arith.truncf %41 : vector<16x256xf32> to vector<16x256xbf16>
    %c0_14 = arith.constant 0 : index
    %c0_15 = arith.constant 0 : index
    %c0_16 = arith.constant 0 : index
    %43 = vector.load %arg3[%c0_14, %c0_15, %c0_16] : memref<2x256x256xbf16, #tpu.memory_space<vmem>>, vector<1x256x256xbf16>
    %44 = vector.shape_cast %43 : vector<1x256x256xbf16> to vector<256x256xbf16>
    %cst_17 = arith.constant dense<0.000000e+00> : vector<16x256xf32>
    %45 = tpu.matmul %42, %44, %cst_17 {dimension_numbers = #tpu.dot_dimension_numbers<[1], [0], [0], [1], [0, 0, 1, 1], [], []>} : vector<16x256xbf16>, vector<256x256xbf16>, vector<16x256xf32> -> vector<16x256xf32>
    %46 = math.tanh %45 : vector<16x256xf32>
    %47 = arith.truncf %46 : vector<16x256xf32> to vector<16x256xbf16>
    %c0_18 = arith.constant 0 : index
    %c0_19 = arith.constant 0 : index
    %c0_20 = arith.constant 0 : index
    %48 = vector.load %arg4[%c0_18, %c0_19, %c0_20] : memref<2x256x256xbf16, #tpu.memory_space<vmem>>, vector<1x256x256xbf16>
    %49 = vector.shape_cast %48 : vector<1x256x256xbf16> to vector<256x256xbf16>
    %cst_21 = arith.constant dense<0.000000e+00> : vector<16x256xf32>
    %50 = tpu.matmul %47, %49, %cst_21 {dimension_numbers = #tpu.dot_dimension_numbers<[1], [0], [0], [1], [0, 0, 1, 1], [], []>} : vector<16x256xbf16>, vector<256x256xbf16>, vector<16x256xf32> -> vector<16x256xf32>
    %51 = arith.addf %41, %50 : vector<16x256xf32>
    %52 = arith.truncf %51 : vector<16x256xf32> to vector<16x256xbf16>
    %c1_22 = arith.constant 1 : index
    %c0_23 = arith.constant 0 : index
    %c0_24 = arith.constant 0 : index
    %53 = vector.load %arg3[%c1_22, %c0_23, %c0_24] : memref<2x256x256xbf16, #tpu.memory_space<vmem>>, vector<1x256x256xbf16>
    %54 = vector.shape_cast %53 : vector<1x256x256xbf16> to vector<256x256xbf16>
    %cst_25 = arith.constant dense<0.000000e+00> : vector<16x256xf32>
    %55 = tpu.matmul %52, %54, %cst_25 {dimension_numbers = #tpu.dot_dimension_numbers<[1], [0], [0], [1], [0, 0, 1, 1], [], []>} : vector<16x256xbf16>, vector<256x256xbf16>, vector<16x256xf32> -> vector<16x256xf32>
    %56 = math.tanh %55 : vector<16x256xf32>
    %57 = arith.truncf %56 : vector<16x256xf32> to vector<16x256xbf16>
    %c1_26 = arith.constant 1 : index
    %c0_27 = arith.constant 0 : index
    %c0_28 = arith.constant 0 : index
    %58 = vector.load %arg4[%c1_26, %c0_27, %c0_28] : memref<2x256x256xbf16, #tpu.memory_space<vmem>>, vector<1x256x256xbf16>
    %59 = vector.shape_cast %58 : vector<1x256x256xbf16> to vector<256x256xbf16>
    %cst_29 = arith.constant dense<0.000000e+00> : vector<16x256xf32>
    %60 = tpu.matmul %57, %59, %cst_29 {dimension_numbers = #tpu.dot_dimension_numbers<[1], [0], [0], [1], [0, 0, 1, 1], [], []>} : vector<16x256xbf16>, vector<256x256xbf16>, vector<16x256xf32> -> vector<16x256xf32>
    %61 = arith.addf %51, %60 : vector<16x256xf32>
    %cst_30 = arith.constant dense<0.000000e+00> : vector<256xf32>
    %62 = vector.multi_reduction <add>, %61, %cst_30 [0] : vector<16x256xf32> to vector<256xf32>
    %63 = vector.shape_cast %62 : vector<256xf32> to vector<1x256xf32>
    %cst_31 = arith.constant 1.600000e+01 : f32
    %64 = vector.broadcast %cst_31 : f32 to vector<1x256xf32>
    %65 = arith.divf %63, %64 : vector<1x256xf32>
    %66 = vector.shape_cast %65 : vector<1x256xf32> to vector<1x1x256xf32>
    %c0_32 = arith.constant 0 : index
    %c0_33 = arith.constant 0 : index
    %c0_34 = arith.constant 0 : index
    %67 = vector.load %arg5[%c0_32, %c0_33, %c0_34] : memref<1x1x256xf32, #tpu.memory_space<vmem>>, vector<1x1x256xf32>
    tpu.vector_store %arg5[%c0_32, %c0_33, %c0_34], %66 {strides = array<i32>} : memref<1x1x256xf32, #tpu.memory_space<vmem>>, vector<1x1x256xf32>,
    return
  }
  func.func @transform_0(%arg0: i32) -> (i32, i32, i32) {
    %c0_i32 = arith.constant 0 : i32
    %c0_i32_0 = arith.constant 0 : i32
    %c0_i32_1 = arith.constant 0 : i32
    return %arg0, %c0_i32, %c0_i32_0 : i32, i32, i32
  }
  func.func @transform_1(%arg0: i32) -> (i32, i32, i32) {
    %c0_i32 = arith.constant 0 : i32
    %c0_i32_0 = arith.constant 0 : i32
    %c0_i32_1 = arith.constant 0 : i32
    %c0_i32_2 = arith.constant 0 : i32
    return %c0_i32, %c0_i32_0, %c0_i32_1 : i32, i32, i32
  }
  func.func @transform_2(%arg0: i32) -> (i32, i32, i32) {
    %c0_i32 = arith.constant 0 : i32
    %c0_i32_0 = arith.constant 0 : i32
    %c0_i32_1 = arith.constant 0 : i32
    %c0_i32_2 = arith.constant 0 : i32
    return %c0_i32, %c0_i32_0, %c0_i32_1 : i32, i32, i32
  }
  func.func @transform_3(%arg0: i32) -> (i32, i32, i32) {
    %c0_i32 = arith.constant 0 : i32
    %c0_i32_0 = arith.constant 0 : i32
    %c0_i32_1 = arith.constant 0 : i32
    %c0_i32_2 = arith.constant 0 : i32
    return %c0_i32, %c0_i32_0, %c0_i32_1 : i32, i32, i32
  }
  func.func @transform_4(%arg0: i32) -> (i32, i32, i32) {
    %c0_i32 = arith.constant 0 : i32
    %c0_i32_0 = arith.constant 0 : i32
    %c0_i32_1 = arith.constant 0 : i32
    return %arg0, %c0_i32, %c0_i32_0 : i32, i32, i32
  }
}

</mosaic_0001>

<bundles_post_ra>
// kernel: _vampnet_extract_impl.1
= control target key start
LH: loop header
LB: loop body
LE: loop exit
PB: predicated region body
PF: predicated region fallthrough
CT: control target
= control target key end

     0   :  { %9 = vsyncpa [#allocation3], 0  ;;  %s3446_s0 = inlined_call_operand.vmem [shape: s32[2,16,4], index: 0, kind: input, shape index: {}]   ;;  %s3447_s1 = inlined_call_operand.hbm [shape: bf16[4,128,256], index: 1, kind: input, shape index: {}]   ;;  %s3448_s2 = inlined_call_operand.hbm [shape: bf16[2,256,256], index: 2, kind: input, shape index: {}]   ;;  %s3449_s3 = inlined_call_operand.hbm [shape: bf16[2,256,256], index: 3, kind: input, shape index: {}]   ;;  %s3450_s4 = inlined_call_operand.hbm [shape: f32[2,1,256], index: 4, kind: output, shape index: {}]  }
   0x1   :  { %10 = vsyncpa [#allocation6], 0 }
   0x2   :  { %11 = vsyncpa [#allocation4], 0 }
   0x3   :  { %13 = vsyncpa [#allocation4 + $0x1], 0  ;;  %s3269_s15 = smov 0   ;;  %s3271_s16 = smov 0  }
   0x4   :  { %s3273_s17 = smov 0   ;;  %s3275_s18 = smov 0  }
   0x5 LB: > { %s3290_s19 = sadd.s32 4294967295, %s3231_s18   ;;  %s1967_s20 = sadd.s32 4294967294, %s3231_s18   ;;  %s3231_s18 = sphi %s3275_s18, %s3458_s18   ;;  %s3227_s17 = sphi %s3273_s17, %s3457_s17   ;;  %s3223_s16 = sphi %s3271_s16, %s3456_s16   ;;  %s3219_s15 = sphi %s3269_s15, %s3455_s15  }
   0x6   : > { %s3294_s21 = sadd.s32 1, %s3231_s18   ;;  %s115_s22 = sadd.s32 1, %s3227_s17 }
   0x7   : > { %s112_s23 = ssub.s32 %s3231_s18, %s3294_s21  ;;  %p125_p0 = scmp.ne.s32.totalorder %s3227_s17, %s3223_s16 }
   0x8   : > { %p113_p1 = scmp.eq.s32.totalorder %s112_s23, 0  ;;  %p126_p2 = scmp.eq.s32.totalorder %s3290_s19, 1 }
   0x9   : > { %p131_p3 = scmp.ne.s32.totalorder %s3223_s16, %s3219_s15  ;;  %p132_p4 = scmp.eq.s32.totalorder %s1967_s20, 1 }
   0xa   : > { %s3305_s24 = scalar_select %p113_p1, %s3227_s17, %s115_s22  }
   0xb   : > { %p3307_p5 = por %p126_p2, %p125_p0  ;;  %p3311_p6 = por %p132_p4, %p131_p3 }
   0xc   : > { %p1968_p7 = scmp.ge.s32.totalorder %s3231_s18, 1  ;;  %p139_p8 = scmp.lt.s32.totalorder %s3231_s18, 3 }
   0xd   : > { %p2997_p9 = scmp.eq.s32.totalorder %s3290_s19, 0  ;;  %s164_s30 = sshll.u32 %s3448_s2, 4  ;;  %s165_s30 = int_to_ptr.hbm [resolvable:$true] %s164_s30 }
   0xe   : > { %p3318_p10 = pnand %p1968_p7, %p139_p8  ;;  %s150_s7 = sshll.u32 %s3447_s1, 4  ;;  %s151_s7 = int_to_ptr.hbm [resolvable:$true] %s150_s7 }
   0xf   : > { %s3233_s9 = smov [#allocation5]   ;;  %s3234_s11 = smov 128  }
  0x10   : > { %p2983_p11 = pneg %p3318_p10  ;;  %s166_s10 = sshll.u32 %s3233_s9, 4  ;;  %s167_s10 = int_to_ptr.vmem [resolvable:$true] %s166_s10 }
  0x11   : > { %s3235_s12 = smov 8   ;;  %s3236_s13 = smov [#allocation2]  }
  0x12   : > { %p3332_p12 = pnand %p2997_p9, %p2983_p11  ;;  %s152_s14 = sshll.u32 %s3236_s13, 4  ;;  %s153_s14 = int_to_ptr.vmem [resolvable:$true] %s152_s14 }
  0x13   : > { %s178_s23 = sshll.u32 %s3449_s3, 4  ;;  %s3237_s28 = smov [#allocation7]   ;;  %s179_s23 = int_to_ptr.hbm [resolvable:$true] %s178_s23 }
  0x14   : > { %2989 = dma.hbm_to_vmem [thread:$0]  (!%p3332_p12), %s165_s30, 8192, %s167_s10, [#allocation6], %s3234_s11, %s3234_s11, %s3235_s12  }
  0x15   : > { %2986 = dma.hbm_to_vmem [thread:$0]  (!%p3332_p12), %s151_s7, 8192, %s153_s14, [#allocation3], %s3234_s11, %s3234_s11, %s3235_s12  }
  0x16   : > { %s180_s29 = sshll.u32 %s3237_s28, 4  ;;  %204 = sbr.rel (%p3318_p10) target bundleno = 938 (0x3aa), region = 36  ;;  %s181_s29 = int_to_ptr.vmem [resolvable:$true] %s180_s29 }
  0x17   : > { %2992 = dma.hbm_to_vmem [thread:$0]  (!%p3332_p12), %s179_s23, 8192, %s181_s29, [#allocation6], %s3234_s11, %s3234_s11, %s3235_s12  }
  0x1b   : > { %3206 = dma.done.wait (%p2997_p9), [#allocation3], 8192  }
  0x1c   : > { %3208 = vsyncadd (%p2997_p9), [#allocation3], 4294959104 }
  0x1d   : > { %3210 = dma.done.wait (%p2997_p9), [#allocation6], 16384  }
  0x1e   : > { %3212 = vsyncadd (%p2997_p9), [#allocation6], 4294950912  ;;  %p241_p13 = scmp.lt.s32.totalorder %s3290_s19, 1  ;;  %v3238_v0 = vmov 1   ;;  %v3239_v1 = vmov 0   ;;  %v3240_v2 = vmov 3  }
  0x1f   : > { %3048 = vset.pattern.permute.xlu1 %v3238_v0  ;;  %3047 = vset.pattern.permute.xlu0 %v3239_v1  ;;  %v2042_v4 = vld [vmem:[#allocation2 + $0xf0] sm:$0xf]  ;;  %v2808_v5 = vld [vmem:[#allocation2 + $0xf4] sm:$0xf0]  ;;  %v2807_v6 = vld [vmem:[#allocation2 + $0xf4] sm:$0xf] }
  0x20   : > { %s242_s27 = scalar_select %p241_p13, %s3290_s19, 1  ;;  %3049 = vset.pattern.permute.xlu2 %v3240_v2  ;;  %v2044_v7 = vld [vmem:[#allocation2 + $0xf8] sm:$0xf0]  ;;  %v2043_v8 = vor.u32 %v2808_v5, %v2042_v4  ;;  %v2110_v10 = vld [vmem:[#allocation2 + $0x70] sm:$0xf]  ;;  %v3241_v0 = vmov 2  }
  0x21   : > { %v2047_v9 = vor.u32 %v2807_v6, %v2044_v7  ;;  %v2792_v11 = vld [vmem:[#allocation2 + $0x74] sm:$0xf0]  ;;  %v2791_v12 = vld [vmem:[#allocation2 + $0x74] sm:$0xf]  ;;  %v2112_v14 = vld [vmem:[#allocation2 + $0x78] sm:$0xf0] }
  0x22   : > { %s2776_s30 = sshll.u32 %s242_s27, 4  ;;  %v2111_v13 = vor.u32 %v2792_v11, %v2110_v10  ;;  %v2034_v15 = vld [vmem:[#allocation2 + $0xe0] sm:$0xf]  ;;  %v2806_v16 = vld [vmem:[#allocation2 + $0xe4] sm:$0xf0]  ;;  %389 = vmatpush.bf16.msra.mxu0 %v2043_v8  ;;  %v2115_v18 = vor.u32 %v2791_v12, %v2112_v14  ;;  %s238_s8 = sand.u32 1, %s3223_s16  }
  0x23   : > { %s245_s7 = scalar_lea.vmem %s3446_s0, %s2776_s30  ;;  %403 = vmatpush.bf16.msra.mxu1 %v2047_v9  ;;  %v2035_v19 = vor.u32 %v2806_v16, %v2034_v15  ;;  %v2805_v20 = vld [vmem:[#allocation2 + $0xe4] sm:$0xf]  ;;  %v2036_v21 = vld [vmem:[#allocation2 + $0xe8] sm:$0xf0]  ;;  %v2102_v22 = vld [vmem:[#allocation2 + $0x60] sm:$0xf] }
  0x24   : > { %v3361_v3 = vld [vmem:[%s245_s7] sm:$0xff]  ;;  %v3366_v17 = vld [vmem:[%s245_s7 + $0x8] sm:$0xff]  ;;  %497 = vmatpush.bf16.msra.mxu2 %v2111_v13  ;;  %v2039_v23 = vor.u32 %v2805_v20, %v2036_v21  ;;  %511 = vmatpush.bf16.msra.mxu3 %v2115_v18  ;;  %v2026_v28 = vld [vmem:[#allocation2 + $0xd0] sm:$0xf]  ;;  %s1977_s9 = sshll.u32 %s238_s8, 1  ;;  %s2773_s10 = sshll.u32 %s3290_s19, 1 }
  0x25   : > { %280 = vperm.xlu1 %3048, %v3361_v3   ;;  %251 = vperm.xlu0 %3047, %v3361_v3   ;;  %v2790_v24 = vld [vmem:[#allocation2 + $0x64] sm:$0xf0]  ;;  %v2789_v25 = vld [vmem:[#allocation2 + $0x64] sm:$0xf]  ;;  %v2104_v26 = vld [vmem:[#allocation2 + $0x68] sm:$0xf0]  ;;  %s1872_s13 = scalar_lea.hbm %s3450_s4, %s2773_s10 }
  0x26   : > { %668 = vperm.xlu2 %3049, %v3361_v3   ;;  %v2103_v27 = vor.u32 %v2790_v24, %v2102_v22  ;;  %v2804_v29 = vld [vmem:[#allocation2 + $0xd4] sm:$0xf0]  ;;  %v2803_v30 = vld [vmem:[#allocation2 + $0xd4] sm:$0xf]  ;;  %v2107_v31 = vor.u32 %v2789_v25, %v2104_v26  ;;  %v2028_v32 = vld [vmem:[#allocation2 + $0xd8] sm:$0xf0]  ;;  %390 = vmatpush.bf16.msra.mxu0 %v2035_v19 }
  0x27   : > { %v2094_v33 = vld [vmem:[#allocation2 + $0x50] sm:$0xf]  ;;  %v2788_v34 = vld [vmem:[#allocation2 + $0x54] sm:$0xf0]  ;;  %404 = vmatpush.bf16.msra.mxu1 %v2039_v23  ;;  %v2027_v35 = vor.u32 %v2804_v29, %v2026_v28  ;;  %v2031_v36 = vor.u32 %v2803_v30, %v2028_v32  ;;  %v2787_v37 = vld [vmem:[#allocation2 + $0x54] sm:$0xf] }
  0x28   : > { %v2096_v38 = vld [vmem:[#allocation2 + $0x58] sm:$0xf0]  ;;  %v2018_v39 = vld [vmem:[#allocation2 + $0xc0] sm:$0xf]  ;;  %v2802_v40 = vld [vmem:[#allocation2 + $0xc4] sm:$0xf0]  ;;  %498 = vmatpush.bf16.msra.mxu2 %v2103_v27  ;;  %v2095_v43 = vor.u32 %v2788_v34, %v2094_v33  ;;  %512 = vmatpush.bf16.msra.mxu3 %v2107_v31 }
  0x29   : > { %v2801_v41 = vld [vmem:[#allocation2 + $0xc4] sm:$0xf]  ;;  %v2020_v42 = vld [vmem:[#allocation2 + $0xc8] sm:$0xf0]  ;;  %v2099_v44 = vor.u32 %v2787_v37, %v2096_v38  ;;  %v2086_v45 = vld [vmem:[#allocation2 + $0x40] sm:$0xf]  ;;  %v2019_v47 = vor.u32 %v2802_v40, %v2018_v39 }
  0x2a   : > { %v2786_v46 = vld [vmem:[#allocation2 + $0x44] sm:$0xf0]  ;;  %391 = vmatpush.bf16.msra.mxu0 %v2027_v35  ;;  %v2023_v48 = vor.u32 %v2801_v41, %v2020_v42  ;;  %v2785_v49 = vld [vmem:[#allocation2 + $0x44] sm:$0xf]  ;;  %v2088_v50 = vld [vmem:[#allocation2 + $0x48] sm:$0xf0] }
  0x2b   : > { %405 = vmatpush.bf16.msra.mxu1 %v2031_v36  ;;  %v2010_v51 = vld [vmem:[#allocation2 + $0xb0] sm:$0xf]  ;;  %v2800_v52 = vld [vmem:[#allocation2 + $0xb4] sm:$0xf0]  ;;  %v2799_v53 = vld [vmem:[#allocation2 + $0xb4] sm:$0xf]  ;;  %v2087_v55 = vor.u32 %v2786_v46, %v2086_v45  ;;  %v2091_v56 = vor.u32 %v2785_v49, %v2088_v50 }
  0x2c   : > { %v2012_v54 = vld [vmem:[#allocation2 + $0xb8] sm:$0xf0]  ;;  %499 = vmatpush.bf16.msra.mxu2 %v2095_v43  ;;  %513 = vmatpush.bf16.msra.mxu3 %v2099_v44  ;;  %v2078_v57 = vld [vmem:[#allocation2 + $0x30] sm:$0xf]  ;;  %v2784_v58 = vld [vmem:[#allocation2 + $0x34] sm:$0xf0]  ;;  %v2011_v59 = vor.u32 %v2800_v52, %v2010_v51 }
  0x2d   : > { %283 = vperm.xlu1 %3048, %v3366_v17   ;;  %254 = vperm.xlu0 %3047, %v3366_v17   ;;  %v2015_v60 = vor.u32 %v2799_v53, %v2012_v54  ;;  %v2783_v61 = vld [vmem:[#allocation2 + $0x34] sm:$0xf]  ;;  %v2080_v62 = vld [vmem:[#allocation2 + $0x38] sm:$0xf0]  ;;  %v2002_v63 = vld [vmem:[#allocation2 + $0xa0] sm:$0xf]  ;;  %v2079_v6 = vor.u32 %v2784_v58, %v2078_v57 }
  0x2e   : > { %671 = vperm.xlu2 %3049, %v3366_v17   ;;  %392 = vmatpush.bf16.msra.mxu0 %v2019_v47  ;;  %v2798_v1 = vld [vmem:[#allocation2 + $0xa4] sm:$0xf0]  ;;  %v2797_v4 = vld [vmem:[#allocation2 + $0xa4] sm:$0xf]  ;;  %v2004_v5 = vld [vmem:[#allocation2 + $0xa8] sm:$0xf0]  ;;  %v2083_v7 = vor.u32 %v2783_v61, %v2080_v62 }
  0x2f   : > { %406 = vmatpush.bf16.msra.mxu1 %v2023_v48  ;;  %v2070_v8 = vld [vmem:[#allocation2 + $0x20] sm:$0xf]  ;;  %v2782_v9 = vld [vmem:[#allocation2 + $0x24] sm:$0xf0]  ;;  %v2003_v10 = vor.u32 %v2798_v1, %v2002_v63  ;;  %v2007_v11 = vor.u32 %v2797_v4, %v2004_v5  ;;  %v2781_v12 = vld [vmem:[#allocation2 + $0x24] sm:$0xf] }
  0x30   : > { %500 = vmatpush.bf16.msra.mxu2 %v2087_v55  ;;  %514 = vmatpush.bf16.msra.mxu3 %v2091_v56  ;;  %v2072_v13 = vld [vmem:[#allocation2 + $0x28] sm:$0xf0]  ;;  %v1994_v14 = vld [vmem:[#allocation2 + $0x90] sm:$0xf]  ;;  %v2796_v15 = vld [vmem:[#allocation2 + $0x94] sm:$0xf0] }
  0x31   : > { %v2795_v16 = vld [vmem:[#allocation2 + $0x94] sm:$0xf]  ;;  %v1996_v18 = vld [vmem:[#allocation2 + $0x98] sm:$0xf0]  ;;  %v2062_v19 = vld [vmem:[#allocation2 + $0x10] sm:$0xf]  ;;  %v1995_v22 = vor.u32 %v2796_v15, %v1994_v14 }
  0x32   : > { %393 = vmatpush.bf16.msra.mxu0 %v2011_v59  ;;  %v2780_v20 = vld [vmem:[#allocation2 + $0x14] sm:$0xf0]  ;;  %v2779_v21 = vld [vmem:[#allocation2 + $0x14] sm:$0xf]  ;;  %v1999_v23 = vor.u32 %v2795_v16, %v1996_v18  ;;  %v2064_v24 = vld [vmem:[#allocation2 + $0x18] sm:$0xf0] }
  0x33   : > { %407 = vmatpush.bf16.msra.mxu1 %v2015_v60  ;;  %v1986_v25 = vld [vmem:[#allocation2 + $0x80] sm:$0xf]  ;;  %v2794_v26 = vld [vmem:[#allocation2 + $0x84] sm:$0xf0]  ;;  %v2793_v27 = vld [vmem:[#allocation2 + $0x84] sm:$0xf]  ;;  %v2063_v33 = vor.u32 %v2780_v20, %v2062_v19  ;;  %v2067_v34 = vor.u32 %v2779_v21, %v2064_v24 }
  0x34   : > { %501 = vmatpush.bf16.msra.mxu2 %v2079_v6  ;;  %515 = vmatpush.bf16.msra.mxu3 %v2083_v7  ;;  %v1988_v28 = vld [vmem:[#allocation2 + $0x88] sm:$0xf0]  ;;  %v2180_v29 = vld [vmem:[#allocation2 + $0x170] sm:$0xf]  ;;  %v2824_v30 = vld [vmem:[#allocation2 + $0x174] sm:$0xf0]  ;;  %v1987_v38 = vor.u32 %v2794_v26, %v1986_v25 }
  0x35   : > { %3051 = vset.pattern.permute.xlu1 %v3241_v0  ;;  %3050 = vset.pattern.permute.xlu0 %v3241_v0  ;;  %v2823_v31 = vld [vmem:[#allocation2 + $0x174] sm:$0xf]  ;;  %v2182_v32 = vld [vmem:[#allocation2 + $0x178] sm:$0xf0]  ;;  %v2054_v35 = vld [vmem:[#allocation2] sm:$0xf]  ;;  %v1991_v39 = vor.u32 %v2793_v27, %v1988_v28  ;;  %v2181_v43 = vor.u32 %v2824_v30, %v2180_v29 }
  0x36   : > { %529 = vperm.xlu1 %3051, %v3366_v17   ;;  %526 = vperm.xlu0 %3050, %v3361_v3   ;;  %v2071_v17 = vor.u32 %v2782_v9, %v2070_v8  ;;  %v2075_v3 = vor.u32 %v2781_v12, %v2072_v13  ;;  %v2778_v36 = vld [vmem:[#allocation2 + $0x4] sm:$0xf0]  ;;  %v2777_v37 = vld [vmem:[#allocation2 + $0x4] sm:$0xf]  ;;  %v2056_v40 = vld [vmem:[#allocation2 + $0x8] sm:$0xf0]  ;;  %v2185_v44 = vor.u32 %v2823_v31, %v2182_v32 }
  0x37   : > { %394 = vmatpush.bf16.msra.mxu0 %v2003_v10  ;;  %408 = vmatpush.bf16.msra.mxu1 %v2007_v11  ;;  %v2250_v41 = vld [vmem:[#allocation2 + $0x1f0] sm:$0xf]  ;;  %v2840_v42 = vld [vmem:[#allocation2 + $0x1f4] sm:$0xf0]  ;;  %v2839_v45 = vld [vmem:[#allocation2 + $0x1f4] sm:$0xf]  ;;  %v2055_v50 = vor.u32 %v2778_v36, %v2054_v35  ;;  %v2059_v51 = vor.u32 %v2777_v37, %v2056_v40 }
  0x38   : > { %502 = vmatpush.bf16.msra.mxu2 %v2071_v17  ;;  %516 = vmatpush.bf16.msra.mxu3 %v2075_v3  ;;  %v2252_v46 = vld [vmem:[#allocation2 + $0x1f8] sm:$0xf0]  ;;  %v2172_v47 = vld [vmem:[#allocation2 + $0x160] sm:$0xf]  ;;  %v2821_v48 = vld [vmem:[#allocation2 + $0x164] sm:$0xf]  ;;  %v2251_v52 = vor.u32 %v2840_v42, %v2250_v41 }
  0x39   : > { %v2174_v49 = vld [vmem:[#allocation2 + $0x168] sm:$0xf0]  ;;  %v2255_v53 = vor.u32 %v2839_v45, %v2252_v46  ;;  %v2242_v54 = vld [vmem:[#allocation2 + $0x1e0] sm:$0xf]  ;;  %v2838_v57 = vld [vmem:[#allocation2 + $0x1e4] sm:$0xf0] }
  0x3a   : > { %v2177_v56 = vor.u32 %v2821_v48, %v2174_v49  ;;  %v2837_v58 = vld [vmem:[#allocation2 + $0x1e4] sm:$0xf]  ;;  %v2244_v59 = vld [vmem:[#allocation2 + $0x1e8] sm:$0xf0]  ;;  %v2243_v60 = vor.u32 %v2838_v57, %v2242_v54  ;;  %v2164_v62 = vld [vmem:[#allocation2 + $0x150] sm:$0xf] }
  0x3b   : > { %395 = vmatpush.bf16.msra.mxu0 %v1995_v22  ;;  %409 = vmatpush.bf16.msra.mxu1 %v1999_v23  ;;  %v2247_v61 = vor.u32 %v2837_v58, %v2244_v59  ;;  %v2820_v63 = vld [vmem:[#allocation2 + $0x154] sm:$0xf0]  ;;  %v2819_v0 = vld [vmem:[#allocation2 + $0x154] sm:$0xf]  ;;  %v2166_v4 = vld [vmem:[#allocation2 + $0x158] sm:$0xf0] }
  0x3c   : > { %503 = vmatpush.bf16.msra.mxu2 %v2063_v33  ;;  %517 = vmatpush.bf16.msra.mxu3 %v2067_v34  ;;  %v2165_v1 = vor.u32 %v2820_v63, %v2164_v62  ;;  %v2234_v5 = vld [vmem:[#allocation2 + $0x1d0] sm:$0xf]  ;;  %v2836_v6 = vld [vmem:[#allocation2 + $0x1d4] sm:$0xf0]  ;;  %v2169_v7 = vor.u32 %v2819_v0, %v2166_v4  ;;  %v2835_v9 = vld [vmem:[#allocation2 + $0x1d4] sm:$0xf] }
  0x3d   : > { %v2235_v8 = vor.u32 %v2836_v6, %v2234_v5  ;;  %v2236_v10 = vld [vmem:[#allocation2 + $0x1d8] sm:$0xf0]  ;;  %v2156_v11 = vld [vmem:[#allocation2 + $0x140] sm:$0xf]  ;;  %v2818_v13 = vld [vmem:[#allocation2 + $0x144] sm:$0xf0] }
  0x3e   : > { %3052 = vset.pattern.permute.xlu0 %v3240_v2  ;;  %v2822_v2 = vld [vmem:[#allocation2 + $0x164] sm:$0xf0]  ;;  %v2239_v12 = vor.u32 %v2835_v9, %v2236_v10  ;;  %v2817_v14 = vld [vmem:[#allocation2 + $0x144] sm:$0xf]  ;;  %v2158_v15 = vld [vmem:[#allocation2 + $0x148] sm:$0xf0]  ;;  %v2157_v16 = vor.u32 %v2818_v13, %v2156_v11  ;;  %v248_v10 = vlaneseq }
  0x3f   : > { %396 = vmatpush.bf16.msra.mxu0 %v1987_v38  ;;  %410 = vmatpush.bf16.msra.mxu1 %v1991_v39  ;;  %v2173_v55 = vor.u32 %v2822_v2, %v2172_v47  ;;  %v2161_v18 = vor.u32 %v2817_v14, %v2158_v15  ;;  %v2226_v17 = vld [vmem:[#allocation2 + $0x1c0] sm:$0xf]  ;;  %v2834_v3 = vld [vmem:[#allocation2 + $0x1c4] sm:$0xf0]  ;;  %v2833_v19 = vld [vmem:[#allocation2 + $0x1c4] sm:$0xf] }
  0x40   : > { %504 = vmatpush.bf16.msra.mxu2 %v2055_v50  ;;  %518 = vmatpush.bf16.msra.mxu3 %v2059_v51  ;;  %v2227_v20 = vor.u32 %v2834_v3, %v2226_v17  ;;  %v2228_v21 = vld [vmem:[#allocation2 + $0x1c8] sm:$0xf0]  ;;  %v2148_v23 = vld [vmem:[#allocation2 + $0x130] sm:$0xf]  ;;  %v2816_v24 = vld [vmem:[#allocation2 + $0x134] sm:$0xf0] }
  0x41   : > { %v2231_v22 = vor.u32 %v2833_v19, %v2228_v21  ;;  %v2815_v25 = vld [vmem:[#allocation2 + $0x134] sm:$0xf]  ;;  %v2149_v26 = vor.u32 %v2816_v24, %v2148_v23  ;;  %v2150_v27 = vld [vmem:[#allocation2 + $0x138] sm:$0xf0]  ;;  %v2218_v28 = vld [vmem:[#allocation2 + $0x1b0] sm:$0xf] }
  0x42   : > { %v2153_v29 = vor.u32 %v2815_v25, %v2150_v27  ;;  %v2832_v30 = vld [vmem:[#allocation2 + $0x1b4] sm:$0xf0]  ;;  %v2831_v31 = vld [vmem:[#allocation2 + $0x1b4] sm:$0xf]  ;;  %v2220_v32 = vld [vmem:[#allocation2 + $0x1b8] sm:$0xf0] }
  0x43   : > { %635 = vmatpush.bf16.msrb.mxu0 %v2181_v43  ;;  %649 = vmatpush.bf16.msrb.mxu1 %v2185_v44  ;;  %v2219_v33 = vor.u32 %v2832_v30, %v2218_v28  ;;  %v2223_v34 = vor.u32 %v2831_v31, %v2220_v32  ;;  %v2140_v35 = vld [vmem:[#allocation2 + $0x120] sm:$0xf]  ;;  %v2814_v36 = vld [vmem:[#allocation2 + $0x124] sm:$0xf0]  ;;  %v2813_v37 = vld [vmem:[#allocation2 + $0x124] sm:$0xf] }
  0x44   : > { %777 = vmatpush.bf16.msrb.mxu2 %v2251_v52  ;;  %791 = vmatpush.bf16.msrb.mxu3 %v2255_v53  ;;  %v2141_v38 = vor.u32 %v2814_v36, %v2140_v35  ;;  %v2142_v39 = vld [vmem:[#allocation2 + $0x128] sm:$0xf0]  ;;  %v2210_v40 = vld [vmem:[#allocation2 + $0x1a0] sm:$0xf]  ;;  %v2830_v41 = vld [vmem:[#allocation2 + $0x1a4] sm:$0xf0] }
  0x45   : > { %v2145_v42 = vor.u32 %v2813_v37, %v2142_v39  ;;  %v2211_v43 = vor.u32 %v2830_v41, %v2210_v40  ;;  %v2829_v44 = vld [vmem:[#allocation2 + $0x1a4] sm:$0xf]  ;;  %v2212_v45 = vld [vmem:[#allocation2 + $0x1a8] sm:$0xf0]  ;;  %v2132_v46 = vld [vmem:[#allocation2 + $0x110] sm:$0xf] }
  0x46   : > { %v2215_v47 = vor.u32 %v2829_v44, %v2212_v45  ;;  %v2812_v2 = vld [vmem:[#allocation2 + $0x114] sm:$0xf0]  ;;  %v2811_v48 = vld [vmem:[#allocation2 + $0x114] sm:$0xf]  ;;  %v2134_v49 = vld [vmem:[#allocation2 + $0x118] sm:$0xf0] }
  0x47   : > { %636 = vmatpush.bf16.msrb.mxu0 %v2173_v55  ;;  %650 = vmatpush.bf16.msrb.mxu1 %v2177_v56  ;;  %v2133_v50 = vor.u32 %v2812_v2, %v2132_v46  ;;  %v2202_v51 = vld [vmem:[#allocation2 + $0x190] sm:$0xf]  ;;  %v2828_v52 = vld [vmem:[#allocation2 + $0x194] sm:$0xf0]  ;;  %v2827_v53 = vld [vmem:[#allocation2 + $0x194] sm:$0xf]  ;;  %v2137_v54 = vor.u32 %v2811_v48, %v2134_v49 }
  0x48   : > { %778 = vmatpush.bf16.msrb.mxu2 %v2243_v60  ;;  %792 = vmatpush.bf16.msrb.mxu3 %v2247_v61  ;;  %v2204_v55 = vld [vmem:[#allocation2 + $0x198] sm:$0xf0]  ;;  %v2124_v56 = vld [vmem:[#allocation2 + $0x100] sm:$0xf]  ;;  %v2810_v57 = vld [vmem:[#allocation2 + $0x104] sm:$0xf0]  ;;  %v2203_v58 = vor.u32 %v2828_v52, %v2202_v51 }
  0x49   : > { %v2207_v59 = vor.u32 %v2827_v53, %v2204_v55  ;;  %v2809_v60 = vld [vmem:[#allocation2 + $0x104] sm:$0xf]  ;;  %v2126_v61 = vld [vmem:[#allocation2 + $0x108] sm:$0xf0]  ;;  %v2194_v62 = vld [vmem:[#allocation2 + $0x180] sm:$0xf] }
  0x4a   : > { %v2826_v63 = vld [vmem:[#allocation2 + $0x184] sm:$0xf0]  ;;  %v2825_v0 = vld [vmem:[#allocation2 + $0x184] sm:$0xf]  ;;  %v2196_v4 = vld [vmem:[#allocation2 + $0x188] sm:$0xf0]  ;;  %v2129_v5 = vor.u32 %v2809_v60, %v2126_v61 }
  0x4b   : > { %637 = vmatpush.bf16.msrb.mxu0 %v2165_v1  ;;  %651 = vmatpush.bf16.msrb.mxu1 %v2169_v7  ;;  %v2125_v1 = vor.u32 %v2810_v57, %v2124_v56  ;;  %v2195_v6 = vor.u32 %v2826_v63, %v2194_v62  ;;  %v2199_v7 = vor.u32 %v2825_v0, %v2196_v4  ;;  %v249_v11 = vand.u32 127, %v248_v10  ;;  %v2318_v3 = vld [vmem:[#allocation5 + $0x70] sm:$0xf]  ;;  %v2856_v19 = vld [vmem:[#allocation5 + $0x74] sm:$0xf0]  ;;  %s240_s14 = scalar_lea.vmem [#allocation8], %s1977_s9 }
  0x4c   : > { %779 = vmatpush.bf16.msrb.mxu2 %v2235_v8  ;;  %793 = vmatpush.bf16.msrb.mxu3 %v2239_v12  ;;  %v3242_v15 = vmov 1.0|1.0   ;;  %v2319_v21 = vor.u32 %v2856_v19, %v2318_v3  ;;  %v2855_v23 = vld [vmem:[#allocation5 + $0x74] sm:$0xf]  ;;  %v2320_v24 = vld [vmem:[#allocation5 + $0x78] sm:$0xf0] }
  0x4d   : > { %v2871_v27 = vld [vmem:[#allocation5 + $0xf4] sm:$0xf]  ;;  %v2384_v28 = vld [vmem:[#allocation5 + $0xf8] sm:$0xf0]  ;;  %v2310_v30 = vld [vmem:[#allocation5 + $0x60] sm:$0xf] }
  0x4e   : > { %v2854_v31 = vld [vmem:[#allocation5 + $0x64] sm:$0xf0]  ;;  %v2374_v32 = vld [vmem:[#allocation5 + $0xe0] sm:$0xf]  ;;  %v2853_v35 = vld [vmem:[#allocation5 + $0x64] sm:$0xf] }
  0x4f   : > { %638 = vmatpush.bf16.msrb.mxu0 %v2157_v16  ;;  %652 = vmatpush.bf16.msrb.mxu1 %v2161_v18  ;;  %v2312_v36 = vld [vmem:[#allocation5 + $0x68] sm:$0xf0]  ;;  %v2869_v39 = vld [vmem:[#allocation5 + $0xe4] sm:$0xf]  ;;  %v2302_v41 = vld [vmem:[#allocation5 + $0x50] sm:$0xf] }
  0x50   : > { %780 = vmatpush.bf16.msrb.mxu2 %v2227_v20  ;;  %794 = vmatpush.bf16.msrb.mxu3 %v2231_v22  ;;  %v2382_v20 = vld [vmem:[#allocation5 + $0xf0] sm:$0xf]  ;;  %v2872_v22 = vld [vmem:[#allocation5 + $0xf4] sm:$0xf0]  ;;  %v2376_v40 = vld [vmem:[#allocation5 + $0xe8] sm:$0xf0] }
  0x51   : > { %v2383_v25 = vor.u32 %v2872_v22, %v2382_v20  ;;  %v2366_v44 = vld [vmem:[#allocation5 + $0xd0] sm:$0xf]  ;;  %v2868_v45 = vld [vmem:[#allocation5 + $0xd4] sm:$0xf0]  ;;  %v2851_v2 = vld [vmem:[#allocation5 + $0x54] sm:$0xf] }
  0x52   : > { %v2304_v48 = vld [vmem:[#allocation5 + $0x58] sm:$0xf0]  ;;  %v2867_v49 = vld [vmem:[#allocation5 + $0xd4] sm:$0xf]  ;;  %v2294_v53 = vld [vmem:[#allocation5 + $0x40] sm:$0xf] }
  0x53   : > { %639 = vmatpush.bf16.msrb.mxu0 %v2149_v26  ;;  %653 = vmatpush.bf16.msrb.mxu1 %v2153_v29  ;;  %v2323_v26 = vor.u32 %v2855_v23, %v2320_v24  ;;  %v2387_v29 = vor.u32 %v2871_v27, %v2384_v28  ;;  %v2368_v51 = vld [vmem:[#allocation5 + $0xd8] sm:$0xf0]  ;;  %v2358_v55 = vld [vmem:[#allocation5 + $0xc0] sm:$0xf]  ;;  %v2866_v57 = vld [vmem:[#allocation5 + $0xc4] sm:$0xf0] }
  0x54   : > { %781 = vmatpush.bf16.msrb.mxu2 %v2219_v33  ;;  %795 = vmatpush.bf16.msrb.mxu3 %v2223_v34  ;;  %v2311_v33 = vor.u32 %v2854_v31, %v2310_v30  ;;  %v2870_v34 = vld [vmem:[#allocation5 + $0xe4] sm:$0xf0]  ;;  %v2371_v52 = vor.u32 %v2867_v49, %v2368_v51  ;;  %v2359_v60 = vor.u32 %v2866_v57, %v2358_v55  ;;  %v2865_v62 = vld [vmem:[#allocation5 + $0xc4] sm:$0xf]  ;;  %v2360_v63 = vld [vmem:[#allocation5 + $0xc8] sm:$0xf0] }
  0x55   : > { %v2375_v37 = vor.u32 %v2870_v34, %v2374_v32  ;;  %v2363_v0 = vor.u32 %v2865_v62, %v2360_v63  ;;  %v2848_v4 = vld [vmem:[#allocation5 + $0x34] sm:$0xf0]  ;;  %v2862_v19 = vld [vmem:[#allocation5 + $0xa4] sm:$0xf0]  ;;  %v2845_v20 = vld [vmem:[#allocation5 + $0x24] sm:$0xf] }
  0x56   : > { %v2861_v24 = vld [vmem:[#allocation5 + $0xa4] sm:$0xf]  ;;  %v2270_v27 = vld [vmem:[#allocation5 + $0x10] sm:$0xf]  ;;  %v2844_v28 = vld [vmem:[#allocation5 + $0x14] sm:$0xf0] }
  0x57   : > { %640 = vmatpush.bf16.msrb.mxu0 %v2141_v38  ;;  %654 = vmatpush.bf16.msrb.mxu1 %v2145_v42  ;;  %v2315_v38 = vor.u32 %v2853_v35, %v2312_v36  ;;  %v2379_v42 = vor.u32 %v2869_v39, %v2376_v40  ;;  %v2271_v30 = vor.u32 %v2844_v28, %v2270_v27  ;;  %v2860_v31 = vld [vmem:[#allocation5 + $0x94] sm:$0xf0]  ;;  %v2843_v32 = vld [vmem:[#allocation5 + $0x14] sm:$0xf]  ;;  %v2262_v39 = vld [vmem:[#allocation5] sm:$0xf] }
  0x58   : > { %782 = vmatpush.bf16.msrb.mxu2 %v2211_v43  ;;  %796 = vmatpush.bf16.msrb.mxu3 %v2215_v47  ;;  %v2852_v43 = vld [vmem:[#allocation5 + $0x54] sm:$0xf0]  ;;  %v2367_v47 = vor.u32 %v2868_v45, %v2366_v44  ;;  %v2859_v36 = vld [vmem:[#allocation5 + $0x94] sm:$0xf]  ;;  %v2842_v40 = vld [vmem:[#allocation5 + $0x4] sm:$0xf0] }
  0x59   : > { %v2303_v46 = vor.u32 %v2852_v43, %v2302_v41  ;;  %v2326_v41 = vld [vmem:[#allocation5 + $0x80] sm:$0xf]  ;;  %v2858_v43 = vld [vmem:[#allocation5 + $0x84] sm:$0xf0]  ;;  %v2841_v44 = vld [vmem:[#allocation5 + $0x4] sm:$0xf] }
  0x5a   : > { %v2264_v45 = vld [vmem:[#allocation5 + $0x8] sm:$0xf0]  ;;  %v2857_v49 = vld [vmem:[#allocation5 + $0x84] sm:$0xf]  ;;  %v2438_v57 = vld [vmem:[#allocation7 + $0x60] sm:$0xf] }
  0x5b   : > { %641 = vmatpush.bf16.msrb.mxu0 %v2133_v50  ;;  %655 = vmatpush.bf16.msrb.mxu1 %v2137_v54  ;;  %v2307_v50 = vor.u32 %v2851_v2, %v2304_v48  ;;  %v2850_v54 = vld [vmem:[#allocation5 + $0x44] sm:$0xf0]  ;;  %v2327_v2 = vor.u32 %v2858_v43, %v2326_v41  ;;  %v2267_v48 = vor.u32 %v2841_v44, %v2264_v45  ;;  %v2885_v62 = vld [vmem:[#allocation7 + $0x64] sm:$0xf]  ;;  %v2440_v63 = vld [vmem:[#allocation7 + $0x68] sm:$0xf0] }
  0x5c   : > { %783 = vmatpush.bf16.msrb.mxu2 %v2203_v58  ;;  %797 = vmatpush.bf16.msrb.mxu3 %v2207_v59  ;;  %v2295_v56 = vor.u32 %v2850_v54, %v2294_v53  ;;  %v2849_v58 = vld [vmem:[#allocation5 + $0x44] sm:$0xf]  ;;  %v2296_v59 = vld [vmem:[#allocation5 + $0x48] sm:$0xf0]  ;;  %v2888_v53 = vld [vmem:[#allocation7 + $0x74] sm:$0xf0] }
  0x5d   : > { %v2299_v61 = vor.u32 %v2849_v58, %v2296_v59  ;;  %v2887_v54 = vld [vmem:[#allocation7 + $0x74] sm:$0xf]  ;;  %v2886_v58 = vld [vmem:[#allocation7 + $0x64] sm:$0xf0]  ;;  %s1874_s20 = sshll.u32 %s240_s14, 4  ;;  %s1876_s22 = sshll.u32 %s1872_s13, 4  ;;  %s1875_s20 = int_to_ptr.vmem [resolvable:$true] %s1874_s20  ;;  %s1877_s22 = int_to_ptr.hbm [resolvable:$true] %s1876_s22 }
  0x5e   : > { %vm1853_vm13 = vcmask 1040384   ;;  %vm1858_vm14 = vcmp.lt.s32.totalorder %v248_v10, 256  ;;  %s1862_s19 = scalar_lea.sflag [#allocation4], %s238_s8  ;;  %s3175_s23 = sshra.s32 %s1877_s22, 4  ;;  %s3176_s23 = int_to_ptr.hbm [resolvable:$true] %s3175_s23 }
  0x5f   : > { %642 = vmatpush.bf16.msrb.mxu0 %v2125_v1  ;;  %656 = vmatpush.bf16.msrb.mxu1 %v2129_v5  ;;  %v2286_v1 = vld [vmem:[#allocation5 + $0x30] sm:$0xf]  ;;  %s3177_s28 = scalar_lea.hbm %s3176_s23, 2  ;;  %s3181_s30 = scalar_lea.hbm %s3450_s4, 4 }
  0x60   : > { %784 = vmatpush.bf16.msrb.mxu2 %v2195_v6  ;;  %798 = vmatpush.bf16.msrb.mxu3 %v2199_v7  ;;  %v2350_v5 = vld [vmem:[#allocation5 + $0xb0] sm:$0xf]  ;;  %v2287_v6 = vor.u32 %v2848_v4, %v2286_v1  ;;  %v2864_v7 = vld [vmem:[#allocation5 + $0xb4] sm:$0xf0]  ;;  %p3178_p0 = scmp.ne.s32.totalorder %s3176_s23, %s3177_s28  ;;  %p3182_p3 = scmp.lt.s32.totalorder %s3176_s23, %s3450_s4 }
  0x61   : > { %p3183_p4 = scmp.lt.s32.totalorder %s3181_s30, %s3177_s28 }
  0x62   : > { %p3179_p1 = pnand %p3178_p0, %p3307_p5 }
  0x63   : > { %p3184_p7 = por %p3183_p4, %p3182_p3 }
  0x64   : > { %p3180_p2 = pneg %p3179_p1 }
  0x66   : > { %p3185_p8 = pnand %p3184_p7, %p3180_p2 }
  0x80   : > { %v669_v14 = vpop.permute.xlu2 %668 }
  0x81   : > { %vm673_vm8 = vcmp.eq.s32.totalorder %v669_v14, %v249_v11  ;;  %v2352_v14 = vld [vmem:[#allocation5 + $0xb8] sm:$0xf0] }
  0x88   : > { %v672_v17 = vpop.permute.xlu2 %671 }
  0x89   : > { %vm674_vm9 = vcmp.eq.s32.totalorder %v672_v17, %v249_v11  ;;  %v2342_v17 = vld [vmem:[#allocation5 + $0xa0] sm:$0xf] }
  0x8a   : > { %vm2256_vm11 = vmpackc.low %vm674_vm9, %vm673_vm8  ;;  %v2343_v22 = vor.u32 %v2862_v19, %v2342_v17  ;;  %v2902_v17 = vld [vmem:[#allocation7 + $0xe4] sm:$0xf0]  ;;  %v2901_v19 = vld [vmem:[#allocation7 + $0xe4] sm:$0xf] }
  0x97   : > { %v281_v8 = vpop.permute.xlu1 %280  ;;  %v252_v9 = vpop.permute.xlu0 %251 }
  0x98   : > { %vm285_vm0 = vcmp.eq.s32.totalorder %v281_v8, %v249_v11  ;;  %vm256_vm3 = vcmp.eq.s32.totalorder %v252_v9, %v249_v11  ;;  %v2847_v8 = vld [vmem:[#allocation5 + $0x34] sm:$0xf]  ;;  %v2288_v9 = vld [vmem:[#allocation5 + $0x38] sm:$0xf0] }
  0x9f   : > { %v284_v12 = vpop.permute.xlu1 %283  ;;  %v255_v13 = vpop.permute.xlu0 %254 }
  0xa0   : > { %vm286_vm1 = vcmp.eq.s32.totalorder %v284_v12, %v249_v11  ;;  %vm257_vm2 = vcmp.eq.s32.totalorder %v255_v13, %v249_v11  ;;  %v2291_v12 = vor.u32 %v2847_v8, %v2288_v9  ;;  %v2863_v13 = vld [vmem:[#allocation5 + $0xb4] sm:$0xf]  ;;  %v2512_v8 = vld [vmem:[#allocation7 + $0xf8] sm:$0xf0]  ;;  %v2443_v9 = vor.u32 %v2885_v62, %v2440_v63 }
  0xa1   : > { %vm2048_vm4 = vmpackc.low %vm286_vm1, %vm285_vm0  ;;  %v2416_v63 = vld [vmem:[#allocation7 + $0x38] sm:$0xf0] }
  0xa2   : > { %vm2116_vm5 = vmpackc.low %vm257_vm2, %vm256_vm3  ;;  %2049 = vmatmul.msk.bf16.vlgmr.msra.gmra.mxu0 %vm2048_vm4, %v3242_v15  ;;  %2051 = vmatmul.msk.bf16.vlgmr.msra.gmra.mxu1 %vm2048_vm4, %v3242_v15 }
  0xa3   : > { %2117 = vmatmul.msk.bf16.vlgmr.msra.gmra.mxu2 %vm2116_vm5, %v3242_v15  ;;  %2119 = vmatmul.msk.bf16.vlgmr.msra.gmra.mxu3 %vm2116_vm5, %v3242_v15 }
  0xa4   : > { %1003 = vmatpush.bf16.msra.mxu0 %v2319_v21  ;;  %1017 = vmatpush.bf16.msra.mxu1 %v2383_v25  ;;  %v2280_v21 = vld [vmem:[#allocation5 + $0x28] sm:$0xf0] }
  0xa5   : > { %1031 = vmatpush.bf16.msra.mxu2 %v2323_v26  ;;  %1045 = vmatpush.bf16.msra.mxu3 %v2387_v29  ;;  %v2283_v23 = vor.u32 %v2845_v20, %v2280_v21  ;;  %v2344_v25 = vld [vmem:[#allocation5 + $0xa8] sm:$0xf0]  ;;  %v2334_v29 = vld [vmem:[#allocation5 + $0x90] sm:$0xf] }
  0xa6   : > { %v2347_v26 = vor.u32 %v2861_v24, %v2344_v25  ;;  %v2335_v34 = vor.u32 %v2860_v31, %v2334_v29  ;;  %v2504_v20 = vld [vmem:[#allocation7 + $0xe8] sm:$0xf0] }
  0xa8   : > { %v530_v16 = vpop.permute.xlu1 %529  ;;  %v527_v18 = vpop.permute.xlu0 %526  ;;  %1004 = vmatpush.bf16.msra.mxu0 %v2311_v33  ;;  %1018 = vmatpush.bf16.msra.mxu1 %v2375_v37  ;;  %v2272_v33 = vld [vmem:[#allocation5 + $0x18] sm:$0xf0] }
  0xa9   : > { %vm532_vm6 = vcmp.eq.s32.totalorder %v530_v16, %v249_v11  ;;  %vm531_vm7 = vcmp.eq.s32.totalorder %v527_v18, %v249_v11  ;;  %1032 = vmatpush.bf16.msra.mxu2 %v2315_v38  ;;  %1046 = vmatpush.bf16.msra.mxu3 %v2379_v42  ;;  %v2351_v11 = vor.u32 %v2864_v7, %v2350_v5  ;;  %v2278_v16 = vld [vmem:[#allocation5 + $0x20] sm:$0xf]  ;;  %v2846_v18 = vld [vmem:[#allocation5 + $0x24] sm:$0xf0]  ;;  %v2336_v37 = vld [vmem:[#allocation5 + $0x98] sm:$0xf0] }
  0xaa   : > { %vm2186_vm10 = vmpackc.low %vm532_vm6, %vm531_vm7  ;;  %v2279_v3 = vor.u32 %v2846_v18, %v2278_v16  ;;  %v2275_v35 = vor.u32 %v2843_v32, %v2272_v33  ;;  %v2339_v38 = vor.u32 %v2859_v36, %v2336_v37  ;;  %v2263_v42 = vor.u32 %v2842_v40, %v2262_v39  ;;  %v2903_v7 = vld [vmem:[#allocation7 + $0xf4] sm:$0xf]  ;;  %v2432_v16 = vld [vmem:[#allocation7 + $0x58] sm:$0xf0] }
  0xab   : > { %v2439_v5 = vor.u32 %v2886_v58, %v2438_v57  ;;  %v2502_v18 = vld [vmem:[#allocation7 + $0xe0] sm:$0xf]  ;;  %v2496_v57 = vld [vmem:[#allocation7 + $0xd8] sm:$0xf0] }
  0xac   : > { %1005 = vmatpush.bf16.msra.mxu0 %v2303_v46  ;;  %1019 = vmatpush.bf16.msra.mxu1 %v2367_v47 }
  0xad   : > { %1033 = vmatpush.bf16.msra.mxu2 %v2307_v50  ;;  %1047 = vmatpush.bf16.msra.mxu3 %v2371_v52  ;;  %v2328_v50 = vld [vmem:[#allocation5 + $0x88] sm:$0xf0]  ;;  %v2446_v52 = vld [vmem:[#allocation7 + $0x70] sm:$0xf] }
  0xae   : > { %v2331_v51 = vor.u32 %v2857_v49, %v2328_v50  ;;  %v2447_v55 = vor.u32 %v2888_v53, %v2446_v52  ;;  %v2881_v49 = vld [vmem:[#allocation7 + $0x44] sm:$0xf]  ;;  %v2494_v53 = vld [vmem:[#allocation7 + $0xd0] sm:$0xf] }
  0xb0   : > { %1006 = vmatpush.bf16.msra.mxu0 %v2295_v56  ;;  %1020 = vmatpush.bf16.msra.mxu1 %v2359_v60  ;;  %v2448_v56 = vld [vmem:[#allocation7 + $0x78] sm:$0xf0] }
  0xb1   : > { %1034 = vmatpush.bf16.msra.mxu2 %v2299_v61  ;;  %1048 = vmatpush.bf16.msra.mxu3 %v2363_v0  ;;  %v2451_v61 = vor.u32 %v2887_v54, %v2448_v56  ;;  %v2510_v0 = vld [vmem:[#allocation7 + $0xf0] sm:$0xf]  ;;  %v2900_v54 = vld [vmem:[#allocation7 + $0xd4] sm:$0xf0] }
  0xb2   : > { %2187 = vmatmul.msk.bf16.vlgmr.msrb.gmra.mxu0 %vm2186_vm10, %v3242_v15  ;;  %2189 = vmatmul.msk.bf16.vlgmr.msrb.gmra.mxu1 %vm2186_vm10, %v3242_v15  ;;  %v2495_v56 = vor.u32 %v2900_v54, %v2494_v53  ;;  %v2574_v54 = vld [vmem:[#allocation5 + $0x170] sm:$0xf] }
  0xb3   : > { %2257 = vmatmul.msk.bf16.vlgmr.msrb.gmra.mxu2 %vm2256_vm11, %v3242_v15  ;;  %2259 = vmatmul.msk.bf16.vlgmr.msrb.gmra.mxu3 %vm2256_vm11, %v3242_v15  ;;  %v2355_v15 = vor.u32 %v2863_v13, %v2352_v14  ;;  %v2430_v13 = vld [vmem:[#allocation7 + $0x50] sm:$0xf]  ;;  %v2884_v14 = vld [vmem:[#allocation7 + $0x54] sm:$0xf0] }
  0xb4   : > { %1007 = vmatpush.bf16.msra.mxu0 %v2287_v6  ;;  %1021 = vmatpush.bf16.msra.mxu1 %v2351_v11  ;;  %v2904_v6 = vld [vmem:[#allocation7 + $0xf4] sm:$0xf0]  ;;  %v2431_v21 = vor.u32 %v2884_v14, %v2430_v13  ;;  %v2408_v14 = vld [vmem:[#allocation7 + $0x28] sm:$0xf0] }
  0xb5   : > { %1035 = vmatpush.bf16.msra.mxu2 %v2291_v12  ;;  %1049 = vmatpush.bf16.msra.mxu3 %v2355_v15  ;;  %v2511_v11 = vor.u32 %v2904_v6, %v2510_v0  ;;  %v2515_v12 = vor.u32 %v2903_v7, %v2512_v8  ;;  %v2883_v15 = vld [vmem:[#allocation7 + $0x54] sm:$0xf]  ;;  %v2488_v7 = vld [vmem:[#allocation7 + $0xc8] sm:$0xf0] }
  0xb8   : > { %1008 = vmatpush.bf16.msra.mxu0 %v2279_v3  ;;  %1022 = vmatpush.bf16.msra.mxu1 %v2343_v22  ;;  %v2503_v3 = vor.u32 %v2902_v17, %v2502_v18  ;;  %v2507_v22 = vor.u32 %v2901_v19, %v2504_v20  ;;  %v2896_v18 = vld [vmem:[#allocation7 + $0xb4] sm:$0xf0]  ;;  %v2895_v17 = vld [vmem:[#allocation7 + $0xb4] sm:$0xf]  ;;  %v2480_v19 = vld [vmem:[#allocation7 + $0xb8] sm:$0xf0] }
  0xb9   : > { %1036 = vmatpush.bf16.msra.mxu2 %v2283_v23  ;;  %1050 = vmatpush.bf16.msra.mxu3 %v2347_v26  ;;  %v2435_v23 = vor.u32 %v2883_v15, %v2432_v16  ;;  %v2478_v16 = vld [vmem:[#allocation7 + $0xb0] sm:$0xf]  ;;  %v2483_v20 = vor.u32 %v2895_v17, %v2480_v19 }
  0xbc   : > { %1009 = vmatpush.bf16.msra.mxu0 %v2271_v30  ;;  %1023 = vmatpush.bf16.msra.mxu1 %v2335_v34 }
  0xbd   : > { %1037 = vmatpush.bf16.msra.mxu2 %v2275_v35  ;;  %1051 = vmatpush.bf16.msra.mxu3 %v2339_v38 }
  0xc0   : > { %1010 = vmatpush.bf16.msra.mxu0 %v2263_v42  ;;  %1024 = vmatpush.bf16.msra.mxu1 %v2327_v2  ;;  %v2422_v2 = vld [vmem:[#allocation7 + $0x40] sm:$0xf] }
  0xc1   : > { %1038 = vmatpush.bf16.msra.mxu2 %v2267_v48  ;;  %1052 = vmatpush.bf16.msra.mxu3 %v2331_v51  ;;  %v2882_v48 = vld [vmem:[#allocation7 + $0x44] sm:$0xf0]  ;;  %v2424_v51 = vld [vmem:[#allocation7 + $0x48] sm:$0xf0] }
  0xc2   : > { %v2423_v50 = vor.u32 %v2882_v48, %v2422_v2  ;;  %v2427_v52 = vor.u32 %v2881_v49, %v2424_v51  ;;  %v2454_v48 = vld [vmem:[#allocation7 + $0x80] sm:$0xf]  ;;  %v2890_v49 = vld [vmem:[#allocation7 + $0x84] sm:$0xf0] }
  0xc3   : > { %v2455_v51 = vor.u32 %v2890_v49, %v2454_v48  ;;  %v2622_v48 = vld [vmem:[#allocation5 + $0x1d0] sm:$0xf]  ;;  %v2932_v49 = vld [vmem:[#allocation5 + $0x1d4] sm:$0xf0] }
  0xc4   : > { %1257 = vmatpush.bf16.msrb.mxu0 %v2447_v55  ;;  %1271 = vmatpush.bf16.msrb.mxu1 %v2511_v11  ;;  %v2899_v55 = vld [vmem:[#allocation7 + $0xd4] sm:$0xf]  ;;  %v2878_v11 = vld [vmem:[#allocation7 + $0x24] sm:$0xf0] }
  0xc5   : > { %1285 = vmatpush.bf16.msrb.mxu2 %v2451_v61  ;;  %1299 = vmatpush.bf16.msrb.mxu3 %v2515_v12  ;;  %v2499_v58 = vor.u32 %v2899_v55, %v2496_v57  ;;  %v2879_v61 = vld [vmem:[#allocation7 + $0x34] sm:$0xf]  ;;  %v2877_v12 = vld [vmem:[#allocation7 + $0x24] sm:$0xf]  ;;  %v2920_v55 = vld [vmem:[#allocation5 + $0x174] sm:$0xf0] }
  0xc6   : > { %v2419_v0 = vor.u32 %v2879_v61, %v2416_v63  ;;  %v2411_v15 = vor.u32 %v2877_v12, %v2408_v14  ;;  %v2575_v57 = vor.u32 %v2920_v55, %v2574_v54  ;;  %v2568_v63 = vld [vmem:[#allocation5 + $0x168] sm:$0xf0]  ;;  %v2916_v12 = vld [vmem:[#allocation5 + $0x154] sm:$0xf0]  ;;  %v2542_v55 = vld [vmem:[#allocation5 + $0x130] sm:$0xf] }
  0xc8   : > { %1258 = vmatpush.bf16.msrb.mxu0 %v2439_v5  ;;  %1272 = vmatpush.bf16.msrb.mxu1 %v2503_v3  ;;  %v2897_v5 = vld [vmem:[#allocation7 + $0xc4] sm:$0xf]  ;;  %v2479_v3 = vor.u32 %v2896_v18, %v2478_v16  ;;  %v2560_v16 = vld [vmem:[#allocation5 + $0x158] sm:$0xf0] }
  0xc9   : > { %1286 = vmatpush.bf16.msrb.mxu2 %v2443_v9  ;;  %1300 = vmatpush.bf16.msrb.mxu3 %v2507_v22  ;;  %v2491_v8 = vor.u32 %v2897_v5, %v2488_v7  ;;  %v2406_v9 = vld [vmem:[#allocation7 + $0x20] sm:$0xf]  ;;  %v2876_v22 = vld [vmem:[#allocation7 + $0x14] sm:$0xf0]  ;;  %v2935_v5 = vld [vmem:[#allocation5 + $0x1f4] sm:$0xf] }
  0xca   : > { %v2407_v13 = vor.u32 %v2878_v11, %v2406_v9  ;;  %v2558_v11 = vld [vmem:[#allocation5 + $0x150] sm:$0xf] }
  0xcb   : > { %v2559_v18 = vor.u32 %v2916_v12, %v2558_v11  ;;  %v2606_v12 = vld [vmem:[#allocation5 + $0x1b0] sm:$0xf] }
  0xcc   : > { %1259 = vmatpush.bf16.msrb.mxu0 %v2431_v21  ;;  %1273 = vmatpush.bf16.msrb.mxu1 %v2495_v56  ;;  %v2398_v21 = vld [vmem:[#allocation7 + $0x10] sm:$0xf]  ;;  %v2919_v56 = vld [vmem:[#allocation5 + $0x174] sm:$0xf] }
  0xcd   : > { %1287 = vmatpush.bf16.msrb.mxu2 %v2435_v23  ;;  %1301 = vmatpush.bf16.msrb.mxu3 %v2499_v58  ;;  %v2875_v23 = vld [vmem:[#allocation7 + $0x14] sm:$0xf]  ;;  %v2576_v58 = vld [vmem:[#allocation5 + $0x178] sm:$0xf0] }
  0xce   : > { %v2579_v61 = vor.u32 %v2919_v56, %v2576_v58  ;;  %v2912_v56 = vld [vmem:[#allocation5 + $0x134] sm:$0xf0] }
  0xcf   : > { %v2543_v58 = vor.u32 %v2912_v56, %v2542_v55  ;;  %v2694_v55 = vld [vmem:[#allocation7 + $0x160] sm:$0xf]  ;;  %v2950_v56 = vld [vmem:[#allocation7 + $0x164] sm:$0xf0] }
  0xd0   : > { %1260 = vmatpush.bf16.msrb.mxu0 %v2423_v50  ;;  %v2889_v50 = vld [vmem:[#allocation7 + $0x84] sm:$0xf] }
  0xd1   : > { %1288 = vmatpush.bf16.msrb.mxu2 %v2427_v52  ;;  %1302 = vmatpush.bf16.msrb.mxu3 %v2491_v8  ;;  %v2456_v52 = vld [vmem:[#allocation7 + $0x88] sm:$0xf0] }
  0xd2   : > { %v2459_v53 = vor.u32 %v2889_v50, %v2456_v52  ;;  %v2931_v52 = vld [vmem:[#allocation5 + $0x1d4] sm:$0xf] }
  0xd5   : > { %1289 = vmatpush.bf16.msrb.mxu2 %v2419_v0  ;;  %1303 = vmatpush.bf16.msrb.mxu3 %v2483_v20  ;;  %v2638_v0 = vld [vmem:[#allocation5 + $0x1f0] sm:$0xf] }
  0xd9   : > { %1290 = vmatpush.bf16.msrb.mxu2 %v2411_v15  ;;  %v2915_v15 = vld [vmem:[#allocation5 + $0x154] sm:$0xf] }
  0xda   : > { %v2563_v17 = vor.u32 %v2915_v15, %v2560_v16  ;;  %v2608_v16 = vld [vmem:[#allocation5 + $0x1b8] sm:$0xf0] }
 0x11f   : > { %v3375_v46 = vpop.f32.mrf.mxu0  ;;  %v3377_v47 = vpop.f32.mrf.mxu1 }
 0x126   : > { %v506_v59 = vpop.f32.mrf.mxu2  ;;  %v520_v60 = vpop.f32.mrf.mxu3 }
 0x127   : > { %v400_v1 = vpop.f32.mrf.mxu0  ;;  %v414_v4 = vpop.f32.mrf.mxu1  ;;  %v507_v32 = vadd.f32 %v506_v59, %v3375_v46  ;;  %v521_v33 = vadd.f32 %v520_v60, %v3377_v47  ;;  %v2414_v59 = vld [vmem:[#allocation7 + $0x30] sm:$0xf]  ;;  %v2880_v60 = vld [vmem:[#allocation7 + $0x34] sm:$0xf0] }
 0x128   : > { %v2415_v62 = vor.u32 %v2880_v60, %v2414_v59  ;;  %v2566_v59 = vld [vmem:[#allocation5 + $0x160] sm:$0xf]  ;;  %v2918_v60 = vld [vmem:[#allocation5 + $0x164] sm:$0xf0] }
 0x12a   : > { %1261 = vmatpush.bf16.msrb.mxu0 %v2415_v62  ;;  %v2917_v62 = vld [vmem:[#allocation5 + $0x164] sm:$0xf] }
 0x12b   : > { %v2571_v7 = vor.u32 %v2917_v62, %v2568_v63  ;;  %v2930_v62 = vld [vmem:[#allocation5 + $0x1c4] sm:$0xf0]  ;;  %v2929_v63 = vld [vmem:[#allocation5 + $0x1c4] sm:$0xf] }
 0x12e   : > { %v508_v24 = vpop.f32.mrf.mxu2  ;;  %v522_v25 = vpop.f32.mrf.mxu3  ;;  %1262 = vmatpush.bf16.msrb.mxu0 %v2407_v13 }
 0x12f   : > { %v644_v26 = vpop.f32.mrf.mxu0  ;;  %v658_v27 = vpop.f32.mrf.mxu1  ;;  %v509_v34 = vadd.f32 %v508_v24, %v400_v1  ;;  %v523_v35 = vadd.f32 %v522_v25, %v414_v4  ;;  %v2486_v1 = vld [vmem:[#allocation7 + $0xc0] sm:$0xf]  ;;  %v2898_v4 = vld [vmem:[#allocation7 + $0xc4] sm:$0xf0]  ;;  %v2399_v24 = vor.u32 %v2876_v22, %v2398_v21  ;;  %v2400_v25 = vld [vmem:[#allocation7 + $0x18] sm:$0xf0] }
 0x130   : > { %v663_v36 = vadd.f32 %v644_v26, %v507_v32  ;;  %v664_v37 = vadd.f32 %v658_v27, %v521_v33  ;;  %v2487_v6 = vor.u32 %v2898_v4, %v2486_v1  ;;  %v2403_v26 = vor.u32 %v2875_v23, %v2400_v25  ;;  %v2470_v27 = vld [vmem:[#allocation7 + $0xa0] sm:$0xf]  ;;  %v2936_v4 = vld [vmem:[#allocation5 + $0x1f4] sm:$0xf0] }
 0x131   : > { %v2390_v33 = vld [vmem:[#allocation7] sm:$0xf]  ;;  %v2567_v1 = vor.u32 %v2918_v60, %v2566_v59  ;;  %v2639_v8 = vor.u32 %v2936_v4, %v2638_v0  ;;  %v2544_v59 = vld [vmem:[#allocation5 + $0x138] sm:$0xf0] }
 0x132   : > { %1274 = vmatpush.bf16.msrb.mxu1 %v2487_v6  ;;  %1263 = vmatpush.bf16.msrb.mxu0 %v2399_v24  ;;  %v2640_v6 = vld [vmem:[#allocation5 + $0x1f8] sm:$0xf0] }
 0x133   : > { %1291 = vmatpush.bf16.msrb.mxu2 %v2403_v26  ;;  %v2643_v9 = vor.u32 %v2935_v5, %v2640_v6  ;;  %v2534_v5 = vld [vmem:[#allocation5 + $0x120] sm:$0xf]  ;;  %v2910_v6 = vld [vmem:[#allocation5 + $0x124] sm:$0xf0] }
 0x136   : > { %v786_v28 = vpop.f32.mrf.mxu2  ;;  %v800_v29 = vpop.f32.mrf.mxu3  ;;  %1275 = vmatpush.bf16.msrb.mxu1 %v2479_v3 }
 0x137   : > { %v646_v30 = vpop.f32.mrf.mxu0  ;;  %v660_v31 = vpop.f32.mrf.mxu1  ;;  %v3381_v42 = vadd.f32 %v786_v28, %v663_v36  ;;  %v3383_v43 = vadd.f32 %v800_v29, %v664_v37  ;;  %v2894_v28 = vld [vmem:[#allocation7 + $0xa4] sm:$0xf0]  ;;  %v2893_v29 = vld [vmem:[#allocation7 + $0xa4] sm:$0xf]  ;;  %v2392_v37 = vld [vmem:[#allocation7 + $0x8] sm:$0xf0] }
 0x138   : > { %v665_v38 = vadd.f32 %v646_v30, %v509_v34  ;;  %v666_v39 = vadd.f32 %v660_v31, %v523_v35  ;;  %v2471_v30 = vor.u32 %v2894_v28, %v2470_v27  ;;  %v2472_v31 = vld [vmem:[#allocation7 + $0xa8] sm:$0xf0]  ;;  %v2874_v34 = vld [vmem:[#allocation7 + $0x4] sm:$0xf0]  ;;  %v2873_v35 = vld [vmem:[#allocation7 + $0x4] sm:$0xf] }
 0x139   : > { %v2475_v32 = vor.u32 %v2893_v29, %v2472_v31  ;;  %v2391_v36 = vor.u32 %v2874_v34, %v2390_v33  ;;  %v2630_v34 = vld [vmem:[#allocation5 + $0x1e0] sm:$0xf] }
 0x13a   : > { %1276 = vmatpush.bf16.msrb.mxu1 %v2471_v30 }
 0x13b   : > { %1304 = vmatpush.bf16.msrb.mxu3 %v2475_v32  ;;  %1264 = vmatpush.bf16.msrb.mxu0 %v2391_v36  ;;  %v2933_v36 = vld [vmem:[#allocation5 + $0x1e4] sm:$0xf] }
 0x13e   : > { %v788_v40 = vpop.f32.mrf.mxu2  ;;  %v802_v41 = vpop.f32.mrf.mxu3 }
 0x13f   : > { %v3385_v44 = vadd.f32 %v788_v40, %v665_v38  ;;  %v3387_v45 = vadd.f32 %v802_v41, %v666_v39  ;;  %v2395_v38 = vor.u32 %v2873_v35, %v2392_v37  ;;  %v2462_v39 = vld [vmem:[#allocation7 + $0x90] sm:$0xf]  ;;  %v2892_v40 = vld [vmem:[#allocation7 + $0x94] sm:$0xf0]  ;;  %v2891_v41 = vld [vmem:[#allocation7 + $0x94] sm:$0xf] }
 0x140   : > { %v2934_v35 = vld [vmem:[#allocation5 + $0x1e4] sm:$0xf0] }
 0x141   : > { %v809_v46 = vpack.c.bf16 %v3385_v44, %v3381_v42  ;;  %v810_v47 = vpack.c.bf16 %v3387_v45, %v3383_v43  ;;  %1292 = vmatpush.bf16.msrb.mxu2 %v2395_v38  ;;  %v2631_v37 = vor.u32 %v2934_v35, %v2630_v34  ;;  %v2632_v38 = vld [vmem:[#allocation5 + $0x1e8] sm:$0xf0]  ;;  %v2590_v35 = vld [vmem:[#allocation5 + $0x190] sm:$0xf] }
 0x143   : > { %1011 = vmatmul.bf16.vlgmr.msra.gmra.mxu0 %v809_v46  ;;  %1025 = vmatmul.bf16.vlgmr.msra.gmra.mxu1 %v810_v47 }
 0x144   : > { %1039 = vmatmul.bf16.vlgmr.msra.gmra.mxu2 %v809_v46  ;;  %1053 = vmatmul.bf16.vlgmr.msra.gmra.mxu3 %v810_v47  ;;  %v2463_v46 = vor.u32 %v2892_v40, %v2462_v39  ;;  %v2464_v47 = vld [vmem:[#allocation7 + $0x98] sm:$0xf0]  ;;  %v2635_v39 = vor.u32 %v2933_v36, %v2632_v38  ;;  %v2550_v40 = vld [vmem:[#allocation5 + $0x140] sm:$0xf]  ;;  %v2924_v36 = vld [vmem:[#allocation5 + $0x194] sm:$0xf0] }
 0x145   : > { %v2467_v2 = vor.u32 %v2891_v41, %v2464_v47  ;;  %1512 = vmatpush.bf16.msra.mxu0 %v2575_v57  ;;  %1540 = vmatpush.bf16.msra.mxu2 %v2579_v61  ;;  %v2914_v41 = vld [vmem:[#allocation5 + $0x144] sm:$0xf0]  ;;  %v2911_v57 = vld [vmem:[#allocation5 + $0x134] sm:$0xf]  ;;  %v2614_v61 = vld [vmem:[#allocation5 + $0x1c0] sm:$0xf]  ;;  %v2591_v38 = vor.u32 %v2924_v36, %v2590_v35 }
 0x146   : > { %1277 = vmatpush.bf16.msrb.mxu1 %v2463_v46  ;;  %v2913_v46 = vld [vmem:[#allocation5 + $0x144] sm:$0xf]  ;;  %v2551_v47 = vor.u32 %v2914_v41, %v2550_v40  ;;  %v2547_v60 = vor.u32 %v2911_v57, %v2544_v59  ;;  %v2615_v0 = vor.u32 %v2930_v62, %v2614_v61  ;;  %v2582_v41 = vld [vmem:[#allocation5 + $0x180] sm:$0xf]  ;;  %v2696_v59 = vld [vmem:[#allocation7 + $0x168] sm:$0xf0] }
 0x147   : > { %1305 = vmatpush.bf16.msrb.mxu3 %v2467_v2  ;;  %v2552_v2 = vld [vmem:[#allocation5 + $0x148] sm:$0xf0] }
 0x148   : > { %v2555_v50 = vor.u32 %v2913_v46, %v2552_v2  ;;  %v2922_v46 = vld [vmem:[#allocation5 + $0x184] sm:$0xf0]  ;;  %v2680_v36 = vld [vmem:[#allocation7 + $0x148] sm:$0xf0] }
 0x149   : > { %1513 = vmatpush.bf16.msra.mxu0 %v2567_v1  ;;  %1541 = vmatpush.bf16.msra.mxu2 %v2571_v7  ;;  %v2616_v1 = vld [vmem:[#allocation5 + $0x1c8] sm:$0xf0]  ;;  %v2909_v7 = vld [vmem:[#allocation5 + $0x124] sm:$0xf]  ;;  %v2583_v2 = vor.u32 %v2922_v46, %v2582_v41  ;;  %v2752_v46 = vld [vmem:[#allocation7 + $0x1d8] sm:$0xf0] }
 0x14a   : > { %1278 = vmatpush.bf16.msrb.mxu1 %v2455_v51  ;;  %v2623_v51 = vor.u32 %v2932_v49, %v2622_v48  ;;  %v2619_v4 = vor.u32 %v2929_v63, %v2616_v1  ;;  %v2584_v48 = vld [vmem:[#allocation5 + $0x188] sm:$0xf0] }
 0x14b   : > { %1306 = vmatpush.bf16.msrb.mxu3 %v2459_v53  ;;  %v2624_v53 = vld [vmem:[#allocation5 + $0x1d8] sm:$0xf0] }
 0x14c   : > { %v2627_v54 = vor.u32 %v2931_v52, %v2624_v53  ;;  %v2951_v52 = vld [vmem:[#allocation7 + $0x174] sm:$0xf] }
 0x14d   : > { %1514 = vmatpush.bf16.msra.mxu0 %v2559_v18  ;;  %1542 = vmatpush.bf16.msra.mxu2 %v2563_v17  ;;  %v2526_v17 = vld [vmem:[#allocation5 + $0x110] sm:$0xf] }
 0x14e   : > { %1526 = vmatpush.bf16.msra.mxu1 %v2639_v8  ;;  %v2535_v8 = vor.u32 %v2910_v6, %v2534_v5 }
 0x14f   : > { %1554 = vmatpush.bf16.msra.mxu3 %v2643_v9  ;;  %v2536_v9 = vld [vmem:[#allocation5 + $0x128] sm:$0xf0] }
 0x150   : > { %v2539_v11 = vor.u32 %v2909_v7, %v2536_v9 }
 0x151   : > { %1515 = vmatpush.bf16.msra.mxu0 %v2551_v47  ;;  %1543 = vmatpush.bf16.msra.mxu2 %v2555_v50  ;;  %v2921_v47 = vld [vmem:[#allocation5 + $0x184] sm:$0xf]  ;;  %v2702_v50 = vld [vmem:[#allocation7 + $0x170] sm:$0xf] }
 0x152   : > { %1527 = vmatpush.bf16.msra.mxu1 %v2631_v37  ;;  %v2923_v37 = vld [vmem:[#allocation5 + $0x194] sm:$0xf]  ;;  %v2587_v49 = vor.u32 %v2921_v47, %v2584_v48  ;;  %v2944_v48 = vld [vmem:[#allocation7 + $0x134] sm:$0xf0] }
 0x153   : > { %1555 = vmatpush.bf16.msra.mxu3 %v2635_v39  ;;  %v2592_v39 = vld [vmem:[#allocation5 + $0x198] sm:$0xf0] }
 0x154   : > { %v2595_v40 = vor.u32 %v2923_v37, %v2592_v39  ;;  %v2964_v39 = vld [vmem:[#allocation7 + $0x1d4] sm:$0xf0] }
 0x155   : > { %1516 = vmatpush.bf16.msra.mxu0 %v2543_v58  ;;  %1544 = vmatpush.bf16.msra.mxu2 %v2547_v60  ;;  %v2949_v58 = vld [vmem:[#allocation7 + $0x164] sm:$0xf]  ;;  %v2695_v60 = vor.u32 %v2950_v56, %v2694_v55 }
 0x156   : > { %1528 = vmatpush.bf16.msra.mxu1 %v2623_v51  ;;  %v2952_v51 = vld [vmem:[#allocation7 + $0x174] sm:$0xf0]  ;;  %v2699_v61 = vor.u32 %v2949_v58, %v2696_v59  ;;  %v2961_v55 = vld [vmem:[#allocation7 + $0x1c4] sm:$0xf]  ;;  %v2662_v59 = vld [vmem:[#allocation7 + $0x120] sm:$0xf] }
 0x157   : > { %1556 = vmatpush.bf16.msra.mxu3 %v2627_v54  ;;  %v2703_v53 = vor.u32 %v2952_v51, %v2702_v50  ;;  %v2704_v54 = vld [vmem:[#allocation7 + $0x178] sm:$0xf0] }
 0x158   : > { %v2707_v57 = vor.u32 %v2951_v52, %v2704_v54  ;;  %v2672_v51 = vld [vmem:[#allocation7 + $0x138] sm:$0xf0]  ;;  %v2962_v54 = vld [vmem:[#allocation7 + $0x1c4] sm:$0xf0] }
 0x159   : > { %1517 = vmatpush.bf16.msra.mxu0 %v2535_v8  ;;  %1545 = vmatpush.bf16.msra.mxu2 %v2539_v11 }
 0x15a   : > { %1529 = vmatpush.bf16.msra.mxu1 %v2615_v0 }
 0x15b   : > { %1557 = vmatpush.bf16.msra.mxu3 %v2619_v4 }
 0x1c0   : > { %v1012_v13 = vpop.f32.mrf.mxu0  ;;  %v1026_v14 = vpop.f32.mrf.mxu1 }
 0x1c1   : > { %v1027_v3 = vadd.f32 %v1026_v14, %v1012_v13  ;;  %v2928_v13 = vld [vmem:[#allocation5 + $0x1b4] sm:$0xf0]  ;;  %v2927_v14 = vld [vmem:[#allocation5 + $0x1b4] sm:$0xf] }
 0x1c2   : > { %v2607_v15 = vor.u32 %v2928_v13, %v2606_v12  ;;  %v2611_v18 = vor.u32 %v2927_v14, %v2608_v16 }
 0x1c3   : > { %3053 = vtanh.f32 %v1027_v3  ;;  %v2908_v3 = vld [vmem:[#allocation5 + $0x114] sm:$0xf0] }
 0x1c4   : > { %1530 = vmatpush.bf16.msra.mxu1 %v2607_v15  ;;  %1558 = vmatpush.bf16.msra.mxu3 %v2611_v18 }
 0x1c7   : > { %v1040_v19 = vpop.f32.mrf.mxu2  ;;  %v1054_v20 = vpop.f32.mrf.mxu3 }
 0x1c8   : > { %v1014_v21 = vpop.f32.mrf.mxu0  ;;  %v1028_v22 = vpop.f32.mrf.mxu1  ;;  %v1055_v24 = vadd.f32 %v1054_v20, %v1040_v19  ;;  %v2907_v19 = vld [vmem:[#allocation5 + $0x114] sm:$0xf]  ;;  %v2527_v20 = vor.u32 %v2908_v3, %v2526_v17  ;;  %v2968_v17 = vld [vmem:[#allocation7 + $0x1f4] sm:$0xf0] }
 0x1c9   : > { %v1029_v23 = vadd.f32 %v1028_v22, %v1014_v21  ;;  %v3054_v27 = vpop.eup %3053  ;;  %v2528_v21 = vld [vmem:[#allocation5 + $0x118] sm:$0xf0]  ;;  %v2967_v3 = vld [vmem:[#allocation7 + $0x1f4] sm:$0xf] }
 0x1ca   : > { %v2531_v22 = vor.u32 %v2907_v19, %v2528_v21  ;;  %1518 = vmatpush.bf16.msra.mxu0 %v2527_v20  ;;  %v2768_v20 = vld [vmem:[#allocation7 + $0x1f8] sm:$0xf0] }
 0x1cb   : > { %3055 = vtanh.f32 %v1029_v23  ;;  %v2598_v23 = vld [vmem:[#allocation5 + $0x1a0] sm:$0xf]  ;;  %v2771_v21 = vor.u32 %v2967_v3, %v2768_v20  ;;  %v2958_v3 = vld [vmem:[#allocation7 + $0x1a4] sm:$0xf0] }
 0x1cc   : > { %3057 = vtanh.f32 %v1055_v24  ;;  %v2926_v24 = vld [vmem:[#allocation5 + $0x1a4] sm:$0xf0]  ;;  %1546 = vmatpush.bf16.msra.mxu2 %v2531_v22  ;;  %v2686_v22 = vld [vmem:[#allocation7 + $0x150] sm:$0xf] }
 0x1cf   : > { %v1042_v25 = vpop.f32.mrf.mxu2  ;;  %v1056_v26 = vpop.f32.mrf.mxu3 }
 0x1d0   : > { %v1057_v28 = vadd.f32 %v1056_v26, %v1042_v25  ;;  %v2925_v25 = vld [vmem:[#allocation5 + $0x1a4] sm:$0xf]  ;;  %v2599_v26 = vor.u32 %v2926_v24, %v2598_v23  ;;  %v2948_v23 = vld [vmem:[#allocation7 + $0x154] sm:$0xf0]  ;;  %v2947_v24 = vld [vmem:[#allocation7 + $0x154] sm:$0xf] }
 0x1d1   : > { %v3056_v29 = vpop.eup %3055 }
 0x1d2   : > { %3059 = vtanh.f32 %v1057_v28  ;;  %v1063_v30 = vpack.c.bf16 %v3056_v29, %v3054_v27  ;;  %v3058_v31 = vpop.eup %3057  ;;  %v2600_v27 = vld [vmem:[#allocation5 + $0x1a8] sm:$0xf0]  ;;  %v2518_v29 = vld [vmem:[#allocation5 + $0x100] sm:$0xf]  ;;  %1531 = vmatpush.bf16.msra.mxu1 %v2599_v26 }
 0x1d3   : > { %v2603_v28 = vor.u32 %v2925_v25, %v2600_v27  ;;  %v2688_v25 = vld [vmem:[#allocation7 + $0x158] sm:$0xf0]  ;;  %v2758_v26 = vld [vmem:[#allocation7 + $0x1e0] sm:$0xf] }
 0x1d4   : > { %1265 = vmatmul.bf16.vlgmr.msrb.gmra.mxu0 %v1063_v30  ;;  %1293 = vmatmul.bf16.vlgmr.msrb.gmra.mxu2 %v1063_v30  ;;  %v2906_v30 = vld [vmem:[#allocation5 + $0x104] sm:$0xf0]  ;;  %v2691_v27 = vor.u32 %v2947_v24, %v2688_v25 }
 0x1d5   : > { %1559 = vmatpush.bf16.msra.mxu3 %v2603_v28  ;;  %v2938_v24 = vld [vmem:[#allocation7 + $0x104] sm:$0xf0] }
 0x1d6   : > { %1532 = vmatpush.bf16.msra.mxu1 %v2591_v38  ;;  %v2750_v38 = vld [vmem:[#allocation7 + $0x1d0] sm:$0xf] }
 0x1d7   : > { %v2751_v41 = vor.u32 %v2964_v39, %v2750_v38 }
 0x1d8   : > { %v3060_v32 = vpop.eup %3059 }
 0x1d9   : > { %v1064_v33 = vpack.c.bf16 %v3060_v32, %v3058_v31  ;;  %v2905_v31 = vld [vmem:[#allocation5 + $0x104] sm:$0xf]  ;;  %v2519_v32 = vor.u32 %v2906_v30, %v2518_v29  ;;  %1560 = vmatpush.bf16.msra.mxu3 %v2595_v40  ;;  %v2760_v30 = vld [vmem:[#allocation7 + $0x1e8] sm:$0xf0]  ;;  %v2963_v40 = vld [vmem:[#allocation7 + $0x1d4] sm:$0xf] }
 0x1da   : > { %1533 = vmatpush.bf16.msra.mxu1 %v2583_v2  ;;  %v2965_v29 = vld [vmem:[#allocation7 + $0x1e4] sm:$0xf]  ;;  %v2755_v47 = vor.u32 %v2963_v40, %v2752_v46  ;;  %v2670_v2 = vld [vmem:[#allocation7 + $0x130] sm:$0xf] }
 0x1db   : > { %1279 = vmatmul.bf16.vlgmr.msrb.gmra.mxu1 %v1064_v33  ;;  %1307 = vmatmul.bf16.vlgmr.msrb.gmra.mxu3 %v1064_v33  ;;  %v2520_v33 = vld [vmem:[#allocation5 + $0x108] sm:$0xf0]  ;;  %v2671_v50 = vor.u32 %v2944_v48, %v2670_v2 }
 0x1dc   : > { %v2523_v34 = vor.u32 %v2905_v31, %v2520_v33  ;;  %1519 = vmatpush.bf16.msra.mxu0 %v2519_v32  ;;  %v2763_v31 = vor.u32 %v2965_v29, %v2760_v30  ;;  %v2678_v32 = vld [vmem:[#allocation7 + $0x140] sm:$0xf]  ;;  %v2946_v33 = vld [vmem:[#allocation7 + $0x144] sm:$0xf0]  ;;  %v2955_v29 = vld [vmem:[#allocation7 + $0x194] sm:$0xf] }
 0x1dd   : > { %1561 = vmatpush.bf16.msra.mxu3 %v2587_v49  ;;  %v2679_v35 = vor.u32 %v2946_v33, %v2678_v32  ;;  %v2943_v49 = vld [vmem:[#allocation7 + $0x134] sm:$0xf]  ;;  %v2710_v33 = vld [vmem:[#allocation7 + $0x180] sm:$0xf] }
 0x1de   : > { %1547 = vmatpush.bf16.msra.mxu2 %v2523_v34  ;;  %v2945_v34 = vld [vmem:[#allocation7 + $0x144] sm:$0xf]  ;;  %v2675_v52 = vor.u32 %v2943_v49, %v2672_v51 }
 0x1df   : > { %v2683_v37 = vor.u32 %v2945_v34, %v2680_v36  ;;  %v2954_v34 = vld [vmem:[#allocation7 + $0x184] sm:$0xf0] }
 0x1e0   : > { %1767 = vmatpush.bf16.msrb.mxu0 %v2703_v53  ;;  %v2742_v53 = vld [vmem:[#allocation7 + $0x1c0] sm:$0xf]  ;;  %v2711_v36 = vor.u32 %v2954_v34, %v2710_v33 }
 0x1e1   : > { %1809 = vmatpush.bf16.msrb.mxu3 %v2771_v21  ;;  %v2743_v56 = vor.u32 %v2962_v54, %v2742_v53  ;;  %v2728_v21 = vld [vmem:[#allocation7 + $0x1a8] sm:$0xf0] }
 0x1e2   : > { %1795 = vmatpush.bf16.msrb.mxu2 %v2707_v57  ;;  %v2744_v57 = vld [vmem:[#allocation7 + $0x1c8] sm:$0xf0] }
 0x1e3   : > { %v2747_v58 = vor.u32 %v2961_v55, %v2744_v57 }
 0x1e4   : > { %1768 = vmatpush.bf16.msrb.mxu0 %v2695_v60  ;;  %v2942_v60 = vld [vmem:[#allocation7 + $0x124] sm:$0xf0] }
 0x1e5   : > { %1810 = vmatpush.bf16.msrb.mxu3 %v2763_v31  ;;  %v2720_v31 = vld [vmem:[#allocation7 + $0x198] sm:$0xf0] }
 0x1e6   : > { %1796 = vmatpush.bf16.msrb.mxu2 %v2699_v61  ;;  %v2941_v61 = vld [vmem:[#allocation7 + $0x124] sm:$0xf]  ;;  %v2723_v32 = vor.u32 %v2955_v29, %v2720_v31 }
 0x1e9   : > { %1811 = vmatpush.bf16.msrb.mxu3 %v2755_v47 }
 0x1ea   : > { %1797 = vmatpush.bf16.msrb.mxu2 %v2691_v27  ;;  %v2718_v27 = vld [vmem:[#allocation7 + $0x190] sm:$0xf] }
 0x1ed   : > { %1812 = vmatpush.bf16.msrb.mxu3 %v2747_v58 }
 0x1ee   : > { %1798 = vmatpush.bf16.msrb.mxu2 %v2683_v37  ;;  %v2712_v37 = vld [vmem:[#allocation7 + $0x188] sm:$0xf0] }
 0x1f2   : > { %1799 = vmatpush.bf16.msrb.mxu2 %v2675_v52 }
 0x251   : > { %v1266_v62 = vpop.f32.mrf.mxu0 }
 0x257   : > { %v1294_v0 = vpop.f32.mrf.mxu2 }
 0x258   : > { %v1280_v63 = vpop.f32.mrf.mxu1 }
 0x259   : > { %v1281_v4 = vadd.f32 %v1280_v63, %v1266_v62  ;;  %v1268_v5 = vpop.f32.mrf.mxu0  ;;  %v2663_v62 = vor.u32 %v2942_v60, %v2662_v59  ;;  %v2664_v63 = vld [vmem:[#allocation7 + $0x128] sm:$0xf0] }
 0x25b   : > { %v3394_v8 = vadd.f32 %v1281_v4, %v3381_v42  ;;  %v2960_v4 = vld [vmem:[#allocation7 + $0x1b4] sm:$0xf0] }
 0x25e   : > { %v1308_v1 = vpop.f32.mrf.mxu3 }
 0x25f   : > { %v1309_v11 = vadd.f32 %v1308_v1, %v1294_v0  ;;  %v1296_v13 = vpop.f32.mrf.mxu2  ;;  %v2667_v0 = vor.u32 %v2941_v61, %v2664_v63  ;;  %v2734_v1 = vld [vmem:[#allocation7 + $0x1b0] sm:$0xf] }
 0x260   : > { %v1282_v6 = vpop.f32.mrf.mxu1 }
 0x261   : > { %v1283_v7 = vadd.f32 %v1282_v6, %v1268_v5  ;;  %v3402_v16 = vadd.f32 %v1309_v11, %v3383_v43  ;;  %v2687_v43 = vor.u32 %v2948_v23, %v2686_v22  ;;  %v2959_v5 = vld [vmem:[#allocation7 + $0x1b4] sm:$0xf]  ;;  %v2735_v6 = vor.u32 %v2960_v4, %v2734_v1  ;;  %1800 = vmatpush.bf16.msrb.mxu2 %v2667_v0  ;;  %v2646_v23 = vld [vmem:[#allocation7 + $0x100] sm:$0xf] }
 0x262   : > { %v2647_v25 = vor.u32 %v2938_v24, %v2646_v23  ;;  %v3243_v1 = vmov 16.0  }
 0x263   : > { %v3397_v9 = vadd.f32 %v1283_v7, %v3385_v44  ;;  %v2766_v44 = vld [vmem:[#allocation7 + $0x1f0] sm:$0xf]  ;;  %1769 = vmatpush.bf16.msrb.mxu0 %v2687_v43  ;;  %v2736_v7 = vld [vmem:[#allocation7 + $0x1b8] sm:$0xf0]  ;;  %v2937_v43 = vld [vmem:[#allocation7 + $0x104] sm:$0xf] }
 0x264   : > { %v2767_v19 = vor.u32 %v2968_v17, %v2766_v44  ;;  %v2739_v11 = vor.u32 %v2959_v5, %v2736_v7  ;;  %v2726_v17 = vld [vmem:[#allocation7 + $0x1a0] sm:$0xf] }
 0x265   : > { %v1317_v12 = vpack.c.bf16 %v3397_v9, %v3394_v8  ;;  %v2727_v20 = vor.u32 %v2958_v3, %v2726_v17 }
 0x266   : > { %v1310_v14 = vpop.f32.mrf.mxu3  ;;  %1781 = vmatpush.bf16.msrb.mxu1 %v2767_v19  ;;  %1813 = vmatpush.bf16.msrb.mxu3 %v2739_v11  ;;  %v2957_v19 = vld [vmem:[#allocation7 + $0x1a4] sm:$0xf] }
 0x267   : > { %v1311_v15 = vadd.f32 %v1310_v14, %v1296_v13  ;;  %1520 = vmatmul.bf16.vlgmr.msra.gmra.mxu0 %v1317_v12  ;;  %1548 = vmatmul.bf16.vlgmr.msra.gmra.mxu2 %v1317_v12  ;;  %v2654_v12 = vld [vmem:[#allocation7 + $0x110] sm:$0xf]  ;;  %v2940_v13 = vld [vmem:[#allocation7 + $0x114] sm:$0xf0]  ;;  %v2939_v14 = vld [vmem:[#allocation7 + $0x114] sm:$0xf]  ;;  %v2731_v22 = vor.u32 %v2957_v19, %v2728_v21 }
 0x268   : > { %1770 = vmatpush.bf16.msrb.mxu0 %v2679_v35  ;;  %v2953_v35 = vld [vmem:[#allocation7 + $0x184] sm:$0xf] }
 0x269   : > { %v3405_v18 = vadd.f32 %v1311_v15, %v3387_v45  ;;  %v2966_v45 = vld [vmem:[#allocation7 + $0x1e4] sm:$0xf0]  ;;  %v2655_v15 = vor.u32 %v2940_v13, %v2654_v12  ;;  %v2715_v38 = vor.u32 %v2953_v35, %v2712_v37 }
 0x26a   : > { %v2759_v28 = vor.u32 %v2966_v45, %v2758_v26  ;;  %v2648_v26 = vld [vmem:[#allocation7 + $0x108] sm:$0xf0]  ;;  %1814 = vmatpush.bf16.msrb.mxu3 %v2731_v22 }
 0x26b   : > { %v1318_v42 = vpack.c.bf16 %v3405_v18, %v3402_v16  ;;  %v2651_v45 = vor.u32 %v2937_v43, %v2648_v26 }
 0x26c   : > { %1782 = vmatpush.bf16.msrb.mxu1 %v2759_v28  ;;  %1771 = vmatpush.bf16.msrb.mxu0 %v2671_v50  ;;  %v2956_v28 = vld [vmem:[#allocation7 + $0x194] sm:$0xf0] }
 0x26d   : > { %1534 = vmatmul.bf16.vlgmr.msra.gmra.mxu1 %v1318_v42  ;;  %1562 = vmatmul.bf16.vlgmr.msra.gmra.mxu3 %v1318_v42  ;;  %v2656_v42 = vld [vmem:[#allocation7 + $0x118] sm:$0xf0]  ;;  %v2719_v30 = vor.u32 %v2956_v28, %v2718_v27 }
 0x26e   : > { %v2659_v44 = vor.u32 %v2939_v14, %v2656_v42  ;;  %1815 = vmatpush.bf16.msrb.mxu3 %v2723_v32 }
 0x270   : > { %1783 = vmatpush.bf16.msrb.mxu1 %v2751_v41  ;;  %1772 = vmatpush.bf16.msrb.mxu0 %v2663_v62 }
 0x271   : > { %1801 = vmatpush.bf16.msrb.mxu2 %v2659_v44 }
 0x272   : > { %1816 = vmatpush.bf16.msrb.mxu3 %v2715_v38 }
 0x274   : > { %1784 = vmatpush.bf16.msrb.mxu1 %v2743_v56  ;;  %1773 = vmatpush.bf16.msrb.mxu0 %v2655_v15 }
 0x275   : > { %1802 = vmatpush.bf16.msrb.mxu2 %v2651_v45 }
 0x278   : > { %1785 = vmatpush.bf16.msrb.mxu1 %v2735_v6  ;;  %1774 = vmatpush.bf16.msrb.mxu0 %v2647_v25 }
 0x27c   : > { %1786 = vmatpush.bf16.msrb.mxu1 %v2727_v20 }
 0x280   : > { %1787 = vmatpush.bf16.msrb.mxu1 %v2719_v30 }
 0x284   : > { %1788 = vmatpush.bf16.msrb.mxu1 %v2711_v36 }
 0x2e4   : > { %v1521_v39 = vpop.f32.mrf.mxu0 }
 0x2ea   : > { %v1535_v40 = vpop.f32.mrf.mxu1  ;;  %v1549_v41 = vpop.f32.mrf.mxu2 }
 0x2eb   : > { %v1536_v46 = vadd.f32 %v1535_v40, %v1521_v39 }
 0x2ec   : > { %v1523_v2 = vpop.f32.mrf.mxu0 }
 0x2ed   : > { %3061 = vtanh.f32 %v1536_v46 }
 0x2f0   : > { %v1563_v47 = vpop.f32.mrf.mxu3 }
 0x2f1   : > { %v1564_v50 = vadd.f32 %v1563_v47, %v1549_v41 }
 0x2f2   : > { %v1537_v48 = vpop.f32.mrf.mxu1  ;;  %v1551_v51 = vpop.f32.mrf.mxu2 }
 0x2f3   : > { %v1538_v49 = vadd.f32 %v1537_v48, %v1523_v2  ;;  %v3062_v54 = vpop.eup %3061 }
 0x2f5   : > { %3063 = vtanh.f32 %v1538_v49 }
 0x2f6   : > { %3065 = vtanh.f32 %v1564_v50 }
 0x2f8   : > { %v1565_v52 = vpop.f32.mrf.mxu3 }
 0x2f9   : > { %v1566_v53 = vadd.f32 %v1565_v52, %v1551_v51 }
 0x2fb   : > { %v3064_v55 = vpop.eup %3063  ;;  %3067 = vtanh.f32 %v1566_v53 }
 0x2fc   : > { %v1572_v56 = vpack.c.bf16 %v3064_v55, %v3062_v54  ;;  %v3066_v57 = vpop.eup %3065  ;;  %3069 = vrcp.f32 %v3243_v1 }
 0x2fe   : > { %1775 = vmatmul.bf16.vlgmr.msrb.gmra.mxu0 %v1572_v56  ;;  %1803 = vmatmul.bf16.vlgmr.msrb.gmra.mxu2 %v1572_v56 }
 0x301   : > { %v3068_v58 = vpop.eup %3067 }
 0x302   : > { %v1573_v59 = vpack.c.bf16 %v3068_v58, %v3066_v57  ;;  %v3070_v12 = vpop.eup %3069 }
 0x303   : > { %v1842_v3 = vmul.f32 16.0, %v3070_v12  ;;  %vm1846_vm12 = vweird.f32 %v3070_v12 }
 0x304   : > { %1789 = vmatmul.bf16.vlgmr.msrb.gmra.mxu1 %v1573_v59  ;;  %1817 = vmatmul.bf16.vlgmr.msrb.gmra.mxu3 %v1573_v59 }
 0x37b   : > { %v1776_v60 = vpop.f32.mrf.mxu0 }
 0x381   : > { %v1790_v61 = vpop.f32.mrf.mxu1  ;;  %v1804_v62 = vpop.f32.mrf.mxu2 }
 0x382   : > { %v1791_v0 = vadd.f32 %v1790_v61, %v1776_v60 }
 0x383   : > { %v1778_v4 = vpop.f32.mrf.mxu0 }
 0x384   : > { %v1823_v7 = vadd.f32 %v1791_v0, %v3394_v8  ;;  %v1843_v8 = vsub.f32 1.0, %v1842_v3 }
 0x386   : > { %v1844_v25 = vmul.f32 %v3070_v12, %v1843_v8 }
 0x387   : > { %v1818_v63 = vpop.f32.mrf.mxu3 }
 0x388   : > { %v1819_v13 = vadd.f32 %v1818_v63, %v1804_v62  ;;  %v1845_v28 = vadd.f32 %v3070_v12, %v1844_v25 }
 0x389   : > { %v1792_v5 = vpop.f32.mrf.mxu1  ;;  %v1806_v15 = vpop.f32.mrf.mxu2 }
 0x38a   : > { %v1793_v6 = vadd.f32 %v1792_v5, %v1778_v4  ;;  %v1824_v19 = vadd.f32 %v1819_v13, %v3402_v16  ;;  %v1847_v30 = vsel %vm1846_vm12, %v3070_v12, %v1845_v28 }
 0x38c   : > { %v1825_v11 = vadd.f32 %v1793_v6, %v3397_v9 }
 0x38e   : > { %v1827_v14 = vadd.f32 %v1825_v11, %v1823_v7 }
 0x38f   : > { %v1820_v42 = vpop.f32.mrf.mxu3 }
 0x390   : > { %v1828_v44 = vrot.slane %v1827_v14, 4  ;;  %v1821_v17 = vadd.f32 %v1820_v42, %v1806_v15 }
 0x392   : > { %v1829_v20 = vadd.f32 %v1828_v44, %v1827_v14  ;;  %v1826_v21 = vadd.f32 %v1821_v17, %v3405_v18 }
 0x394   : > { %v1830_v22 = vrot.slane %v1829_v20, 2  ;;  %v1834_v23 = vadd.f32 %v1826_v21, %v1824_v19 }
 0x396   : > { %v1835_v24 = vrot.slane %v1834_v23, 4  ;;  %v1831_v9 = vadd.f32 %v1830_v22, %v1829_v20 }
 0x398   : > { %v1836_v43 = vadd.f32 %v1835_v24, %v1834_v23  ;;  %v1832_v45 = vrot.slane %v1831_v9, 1 }
 0x39a   : > { %v1837_v26 = vrot.slane %v1836_v43, 2  ;;  %v1833_v16 = vadd.f32 %v1832_v45, %v1831_v9 }
 0x39c   : > { %v1838_v27 = vadd.f32 %v1837_v26, %v1836_v43  ;;  %v1848_v32 = vmul.f32 %v1847_v30, %v1833_v16 }
 0x39e   : > { %v1839_v29 = vrot.slane %v1838_v27, 1 }
 0x3a0   : > { %v1840_v18 = vadd.f32 %v1839_v29, %v1838_v27 }
 0x3a2   : > { %v1849_v31 = vmul.f32 %v1847_v30, %v1840_v18 }
 0x3a4   : > { %v1852_v33 = vrot.slane %v1849_v31, 7 }
 0x3a6   : > { %v1854_v34 = vsel %vm1853_vm13, %v1848_v32, %v1852_v33 }
 0x3a7   : > { %1860 = vst.msk [vmem:[%s240_s14] sm:$0x3] %vm1858_vm14, %v1854_v34 }
 0x3a8   : > { %3188 = shalt.err (!%p3185_p8)
}
 0x3a9   : > { %2981 = dma.vmem_to_hbm [thread:$0]  (%p3307_p5), %s1875_s20, 32, %s1877_s22, %s1862_s19  }
 0x3aa PF: > { %p3003_p9 = scmp.ge.s32.totalorder %s3231_s18, 2  ;;  %s1888_s7 = sand.u32 1, %s3219_s15  }
 0x3ab   : > { %s1889_s8 = scalar_lea.sflag [#allocation4], %s1888_s7 }
 0x3ac   : > { %p2994_p10 = pnand %p3003_p9, %p3311_p6 }
 0x3ae   : > { %p2995_p11 = pneg %p2994_p10 }
 0x3b0   : > { %3214 = dma.done.wait (%p2995_p11), %s1889_s8, 32  }
 0x3b1   : > { %3216 = vsyncadd (%p2995_p11), %s1889_s8, 4294967264  ;;  %p16_p12 = scmp.ge.s32.totalorder %s3294_s21, 4   ;;  %s3455_s15 = smov %s3223_s16 }
 0x3b2   : > { %s3456_s16 = smov %s3227_s17  ;;  %s3457_s17 = smov %s3305_s24 }
 0x3b3   : > { %s3458_s18 = smov %s3294_s21  ;;  %18 = sbr.rel (!%p16_p12) target bundleno = 5 (0x5), region = 89 }
 0x3b8   :  { %1895 = vsyncpa [#allocation3], 1 }
 0x3b9   :  { %1897 = vsyncpa [#allocation3 + $0x1], 1 }
 0x3ba   :  { %1898 = vsyncpa [#allocation6], 1 }
 0x3bb   :  { %1899 = vsyncpa [#allocation4], 1 }
 0x3bc   :  { %1901 = vsyncpa [#allocation4 + $0x1], 1 }

</bundles_post_ra>
